<compile_context>
chip_gen: v7x
topology: tpu7x:2x2x1
jax: 0.10.0
libtpu: 0.0.40
codegen_flags: <defaults>
</compile_context>

<pallas_src>
import functools

import jax
import jax.numpy as jnp
from jax.experimental import pallas as pl
from jax.experimental.pallas import tpu as pltpu

KSIZE = 3
PAD = KSIZE // 2


def _dwconv3x3_kernel(x_ref, w_ref, b_ref, o_ref, *, ct):
    """Depthwise 3x3 'same' conv + bias on one lane-packed (H, W*ct) block.

    x_ref: (1, 1, H, WC)  input block, channels packed fastest on the lane axis
    w_ref: (1, 9, WC)     per-tap weights, pre-tiled along W on the lane axis
    b_ref: (1, 1, WC)     per-channel bias, pre-tiled along W
    o_ref: (1, 1, H, WC)  output block
    """
    _, _, H, WC = o_ref.shape
    x = x_ref[0, 0]                                     # (H, WC) f32
    wv = w_ref[0]                                       # (9, WC)

    # Fused 'same' zero padding in VMEM: one ghost row on the sublane axis and
    # one ghost pixel (= ct lanes) on each side of the packed lane axis.
    zrow = jnp.zeros((1, WC), jnp.float32)
    xp = jnp.concatenate([zrow, x, zrow], axis=0)       # (H+2, WC)
    zcol = jnp.zeros((H + 2, ct), jnp.float32)
    xp = jnp.concatenate([zcol, xp, zcol], axis=1)      # (H+2, WC + 2*ct)

    acc = jnp.zeros((H, WC), jnp.float32) + b_ref[0]    # bias broadcast over rows
    for t in range(KSIZE * KSIZE):                      # 9-tap unrolled stencil
        kh, kw = divmod(t, KSIZE)
        tap = xp[kh:kh + H, kw * ct: kw * ct + WC]      # shifted (lane/sublane) view
        acc = acc + tap * wv[t:t + 1, :]
    o_ref[0, 0] = acc


def _pick_channel_tile(C, H, W, max_block_bytes):
    """Largest divisor of C whose (H, W*Ct) f32 block stays under the byte cap."""
    best = 1
    for ct in range(1, C + 1):
        if C % ct == 0 and H * W * ct * 4 <= max_block_bytes:
            best = ct
    return best


def dwconv_forward(x_nchw, weight, bias, *, max_block_bytes=1 << 20):
    """Depthwise 3x3 conv, stride 1, padding 1, bias, groups=C (NCHW in/out)."""
    N, C, H, W = x_nchw.shape
    ct = _pick_channel_tile(C, H, W, max_block_bytes)
    G = C // ct
    WC = W * ct

    x = x_nchw.astype(jnp.float32)
    # Pack to (N, G, H, W*ct): channels fastest within the lane axis.
    x_packed = (x.reshape(N, G, ct, H, W)
                 .transpose(0, 1, 3, 4, 2)
                 .reshape(N, G, H, WC))

    # Weights: torch (C, 1, 3, 3) -> per-group (G, 9, ct), tiled along W so the
    # lane index j = w*ct + c picks the weight of channel c for every w.
    w = weight.reshape(C, KSIZE, KSIZE).astype(jnp.float32)
    w_packed = jnp.tile(
        w.reshape(G, ct, KSIZE, KSIZE).transpose(0, 2, 3, 1).reshape(G, KSIZE * KSIZE, ct),
        (1, 1, W))
    b_packed = jnp.tile(bias.astype(jnp.float32).reshape(G, ct), (1, W)).reshape(G, 1, WC)

    kernel = functools.partial(_dwconv3x3_kernel, ct=ct)
    out_packed = pl.pallas_call(
        kernel,
        out_shape=jax.ShapeDtypeStruct((N, G, H, WC), jnp.float32),
        grid_spec=pltpu.PrefetchScalarGridSpec(
            num_scalar_prefetch=0,
            # Batch innermost so the per-group weight/bias blocks stay resident
            # in VMEM across all N images of a channel group.
            grid=(G, N),
            in_specs=[
                pl.BlockSpec((1, 1, H, WC), lambda g, n: (n, g, 0, 0)),
                pl.BlockSpec((1, KSIZE * KSIZE, WC), lambda g, n: (g, 0, 0)),
                pl.BlockSpec((1, 1, WC), lambda g, n: (g, 0, 0)),
            ],
            out_specs=pl.BlockSpec((1, 1, H, WC), lambda g, n: (n, g, 0, 0)),
        ),
        compiler_params=pltpu.CompilerParams(
            dimension_semantics=("parallel", "parallel")),
    )(x_packed, w_packed, b_packed)

    # Unpack back to NCHW.
    out = (out_packed.reshape(N, G, H, W, ct)
                     .transpose(0, 1, 4, 2, 3)
                     .reshape(N, C, H, W))
    return out.astype(x_nchw.dtype)


def _dwconv_ref(x, w, b):
    """Pure-JAX reference: depthwise 3x3, stride 1, padding 1, bias."""
    N, C, H, W = x.shape
    xp = jnp.pad(x, ((0, 0), (0, 0), (PAD, PAD), (PAD, PAD)))
    out = jnp.zeros_like(x)
    for kh in range(KSIZE):
        for kw in range(KSIZE):
            out = out + xp[:, :, kh:kh + H, kw:kw + W] * w[None, :, kh, kw, None, None]
    return out + b[None, :, None, None]


if __name__ == "__main__":
    key = jax.random.PRNGKey(0)
    N, C, H, W = 2, 64, 16, 16
    kx, kw_, kb = jax.random.split(key, 3)

    x = jax.random.normal(kx, (N, C, H, W), jnp.float32)                 # NCHW
    # PyTorch nn.Conv2d(C, C, 3, 1, 1, bias=True, groups=C): weight (C,1,3,3), bias (C,)
    weight = jax.random.normal(kw_, (C, 1, KSIZE, KSIZE), jnp.float32) * (1.0 / 3.0)
    bias = jax.random.normal(kb, (C,), jnp.float32) * 0.1

    fwd = jax.jit(dwconv_forward, static_argnames=("max_block_bytes",))
    out = jax.block_until_ready(fwd(x, weight, bias))
    assert out.shape == (N, C, H, W) and out.dtype == jnp.float32

    ref = _dwconv_ref(x, weight.reshape(C, KSIZE, KSIZE), bias)
    assert float(jnp.max(jnp.abs(out - ref))) < 1e-4

    # Also exercise the channel-tiled (G > 1) path with a smaller VMEM block cap.
    out_tiled = jax.block_until_ready(fwd(x, weight, bias, max_block_bytes=32 * 1024))
    assert float(jnp.max(jnp.abs(out_tiled - ref))) < 1e-4

    print("KERNEL_OK")
</pallas_src>

<mosaic_0001>
module attributes {stable_mosaic.version = 11 : i64} {
  func.func @_dwconv3x3_kernel(%arg0: i32, %arg1: i32, %arg2: memref<1x1x16x1024xf32, #tpu.memory_space<vmem>>, %arg3: memref<1x9x1024xf32, #tpu.memory_space<vmem>>, %arg4: memref<1x1x1024xf32, #tpu.memory_space<vmem>>, %arg5: memref<1x1x16x1024xf32, #tpu.memory_space<vmem>>) attributes {dimension_semantics = [#tpu.dimension_semantics<parallel>, #tpu.dimension_semantics<parallel>], iteration_bounds = array<i64: 1, 2>, scalar_prefetch = 0 : i64, scratch_operands = 0 : i64, tpu.core_type = #tpu.core_type<tc>, window_params = [{transform_indices = @transform_0, window_bounds = array<i64: 1, 1, 16, 1024>}, {transform_indices = @transform_1, window_bounds = array<i64: 1, 9, 1024>}, {transform_indices = @transform_2, window_bounds = array<i64: 1, 1, 1024>}, {transform_indices = @transform_3, window_bounds = array<i64: 1, 1, 16, 1024>}]} {
    %c0 = arith.constant 0 : index
    %c0_0 = arith.constant 0 : index
    %c0_1 = arith.constant 0 : index
    %c0_2 = arith.constant 0 : index
    %0 = vector.load %arg2[%c0, %c0_0, %c0_1, %c0_2] : memref<1x1x16x1024xf32, #tpu.memory_space<vmem>>, vector<1x1x16x1024xf32>
    %1 = vector.shape_cast %0 : vector<1x1x16x1024xf32> to vector<16x1024xf32>
    %c0_3 = arith.constant 0 : index
    %c0_4 = arith.constant 0 : index
    %c0_5 = arith.constant 0 : index
    %2 = vector.load %arg3[%c0_3, %c0_4, %c0_5] : memref<1x9x1024xf32, #tpu.memory_space<vmem>>, vector<1x9x1024xf32>
    %3 = vector.shape_cast %2 : vector<1x9x1024xf32> to vector<9x1024xf32>
    %cst = arith.constant 0.000000e+00 : f32
    %4 = vector.broadcast %cst : f32 to vector<1x1024xf32>
    %5 = tpu.concatenate %4, %1, %4 in 0 : vector<1x1024xf32>, vector<16x1024xf32>, vector<1x1024xf32> -> vector<18x1024xf32>
    %cst_6 = arith.constant 0.000000e+00 : f32
    %6 = vector.broadcast %cst_6 : f32 to vector<18x64xf32>
    %7 = tpu.concatenate %6, %5, %6 in 1 : vector<18x64xf32>, vector<18x1024xf32>, vector<18x64xf32> -> vector<18x1152xf32>
    %cst_7 = arith.constant 0.000000e+00 : f32
    %8 = vector.broadcast %cst_7 : f32 to vector<16x1024xf32>
    %c0_8 = arith.constant 0 : index
    %c0_9 = arith.constant 0 : index
    %c0_10 = arith.constant 0 : index
    %9 = vector.load %arg4[%c0_8, %c0_9, %c0_10] : memref<1x1x1024xf32, #tpu.memory_space<vmem>>, vector<1x1x1024xf32>
    %10 = vector.shape_cast %9 : vector<1x1x1024xf32> to vector<1x1024xf32>
    %11 = vector.broadcast %10 : vector<1x1024xf32> to vector<16x1024xf32>
    %12 = arith.addf %8, %11 : vector<16x1024xf32>
    %13 = vector.extract_strided_slice %7 {offsets = [0, 0], sizes = [16, 1024], strides = [1, 1]} : vector<18x1152xf32> to vector<16x1024xf32>
    %14 = vector.extract_strided_slice %3 {offsets = [0, 0], sizes = [1, 1024], strides = [1, 1]} : vector<9x1024xf32> to vector<1x1024xf32>
    %15 = vector.broadcast %14 : vector<1x1024xf32> to vector<16x1024xf32>
    %16 = arith.mulf %13, %15 : vector<16x1024xf32>
    %17 = arith.addf %12, %16 : vector<16x1024xf32>
    %18 = vector.extract_strided_slice %7 {offsets = [0, 64], sizes = [16, 1024], strides = [1, 1]} : vector<18x1152xf32> to vector<16x1024xf32>
    %19 = vector.extract_strided_slice %3 {offsets = [1, 0], sizes = [1, 1024], strides = [1, 1]} : vector<9x1024xf32> to vector<1x1024xf32>
    %20 = vector.broadcast %19 : vector<1x1024xf32> to vector<16x1024xf32>
    %21 = arith.mulf %18, %20 : vector<16x1024xf32>
    %22 = arith.addf %17, %21 : vector<16x1024xf32>
    %23 = vector.extract_strided_slice %7 {offsets = [0, 128], sizes = [16, 1024], strides = [1, 1]} : vector<18x1152xf32> to vector<16x1024xf32>
    %24 = vector.extract_strided_slice %3 {offsets = [2, 0], sizes = [1, 1024], strides = [1, 1]} : vector<9x1024xf32> to vector<1x1024xf32>
    %25 = vector.broadcast %24 : vector<1x1024xf32> to vector<16x1024xf32>
    %26 = arith.mulf %23, %25 : vector<16x1024xf32>
    %27 = arith.addf %22, %26 : vector<16x1024xf32>
    %28 = vector.extract_strided_slice %7 {offsets = [1, 0], sizes = [16, 1024], strides = [1, 1]} : vector<18x1152xf32> to vector<16x1024xf32>
    %29 = vector.extract_strided_slice %3 {offsets = [3, 0], sizes = [1, 1024], strides = [1, 1]} : vector<9x1024xf32> to vector<1x1024xf32>
    %30 = vector.broadcast %29 : vector<1x1024xf32> to vector<16x1024xf32>
    %31 = arith.mulf %28, %30 : vector<16x1024xf32>
    %32 = arith.addf %27, %31 : vector<16x1024xf32>
    %33 = vector.extract_strided_slice %7 {offsets = [1, 64], sizes = [16, 1024], strides = [1, 1]} : vector<18x1152xf32> to vector<16x1024xf32>
    %34 = vector.extract_strided_slice %3 {offsets = [4, 0], sizes = [1, 1024], strides = [1, 1]} : vector<9x1024xf32> to vector<1x1024xf32>
    %35 = vector.broadcast %34 : vector<1x1024xf32> to vector<16x1024xf32>
    %36 = arith.mulf %33, %35 : vector<16x1024xf32>
    %37 = arith.addf %32, %36 : vector<16x1024xf32>
    %38 = vector.extract_strided_slice %7 {offsets = [1, 128], sizes = [16, 1024], strides = [1, 1]} : vector<18x1152xf32> to vector<16x1024xf32>
    %39 = vector.extract_strided_slice %3 {offsets = [5, 0], sizes = [1, 1024], strides = [1, 1]} : vector<9x1024xf32> to vector<1x1024xf32>
    %40 = vector.broadcast %39 : vector<1x1024xf32> to vector<16x1024xf32>
    %41 = arith.mulf %38, %40 : vector<16x1024xf32>
    %42 = arith.addf %37, %41 : vector<16x1024xf32>
    %43 = vector.extract_strided_slice %7 {offsets = [2, 0], sizes = [16, 1024], strides = [1, 1]} : vector<18x1152xf32> to vector<16x1024xf32>
    %44 = vector.extract_strided_slice %3 {offsets = [6, 0], sizes = [1, 1024], strides = [1, 1]} : vector<9x1024xf32> to vector<1x1024xf32>
    %45 = vector.broadcast %44 : vector<1x1024xf32> to vector<16x1024xf32>
    %46 = arith.mulf %43, %45 : vector<16x1024xf32>
    %47 = arith.addf %42, %46 : vector<16x1024xf32>
    %48 = vector.extract_strided_slice %7 {offsets = [2, 64], sizes = [16, 1024], strides = [1, 1]} : vector<18x1152xf32> to vector<16x1024xf32>
    %49 = vector.extract_strided_slice %3 {offsets = [7, 0], sizes = [1, 1024], strides = [1, 1]} : vector<9x1024xf32> to vector<1x1024xf32>
    %50 = vector.broadcast %49 : vector<1x1024xf32> to vector<16x1024xf32>
    %51 = arith.mulf %48, %50 : vector<16x1024xf32>
    %52 = arith.addf %47, %51 : vector<16x1024xf32>
    %53 = vector.extract_strided_slice %7 {offsets = [2, 128], sizes = [16, 1024], strides = [1, 1]} : vector<18x1152xf32> to vector<16x1024xf32>
    %54 = vector.extract_strided_slice %3 {offsets = [8, 0], sizes = [1, 1024], strides = [1, 1]} : vector<9x1024xf32> to vector<1x1024xf32>
    %55 = vector.broadcast %54 : vector<1x1024xf32> to vector<16x1024xf32>
    %56 = arith.mulf %53, %55 : vector<16x1024xf32>
    %57 = arith.addf %52, %56 : vector<16x1024xf32>
    %c0_11 = arith.constant 0 : index
    %c0_12 = arith.constant 0 : index
    %c0_13 = arith.constant 0 : index
    %c0_14 = arith.constant 0 : index
    %58 = vector.load %arg5[%c0_11, %c0_12, %c0_13, %c0_14] : memref<1x1x16x1024xf32, #tpu.memory_space<vmem>>, vector<1x1x16x1024xf32>
    %59 = vector.shape_cast %58 : vector<1x1x16x1024xf32> to vector<16x1024xf32>
    %60 = vector.shape_cast %57 : vector<16x1024xf32> to vector<1x1x16x1024xf32>
    tpu.vector_store %arg5[%c0_11, %c0_12, %c0_13, %c0_14], %60 {strides = array<i32>} : memref<1x1x16x1024xf32, #tpu.memory_space<vmem>>, vector<1x1x16x1024xf32>,
    return
  }
  func.func @transform_0(%arg0: i32, %arg1: i32) -> (i32, i32, i32, i32) {
    %c0_i32 = arith.constant 0 : i32
    %c0_i32_0 = arith.constant 0 : i32
    %c0_i32_1 = arith.constant 0 : i32
    return %arg1, %arg0, %c0_i32, %c0_i32_0 : i32, i32, i32, i32
  }
  func.func @transform_1(%arg0: i32, %arg1: i32) -> (i32, i32, i32) {
    %c0_i32 = arith.constant 0 : i32
    %c0_i32_0 = arith.constant 0 : i32
    %c0_i32_1 = arith.constant 0 : i32
    return %arg0, %c0_i32, %c0_i32_0 : i32, i32, i32
  }
  func.func @transform_2(%arg0: i32, %arg1: i32) -> (i32, i32, i32) {
    %c0_i32 = arith.constant 0 : i32
    %c0_i32_0 = arith.constant 0 : i32
    %c0_i32_1 = arith.constant 0 : i32
    return %arg0, %c0_i32, %c0_i32_0 : i32, i32, i32
  }
  func.func @transform_3(%arg0: i32, %arg1: i32) -> (i32, i32, i32, i32) {
    %c0_i32 = arith.constant 0 : i32
    %c0_i32_0 = arith.constant 0 : i32
    %c0_i32_1 = arith.constant 0 : i32
    return %arg1, %arg0, %c0_i32, %c0_i32_0 : i32, i32, i32, i32
  }
}

</mosaic_0001>

<bundles_post_ra>
// kernel: dwconv_forward.1
= control target key start
LH: loop header
LB: loop body
LE: loop exit
PB: predicated region body
PF: predicated region fallthrough
CT: control target
= control target key end

     0   :  { %s2190_s12 = smov 0   ;;  %s2192_s13 = smov 0   ;;  %s4010_s0 = inlined_call_operand.vmem [shape: f32[2,1,16,1024], index: 0, kind: input, shape index: {}]   ;;  %s4011_s1 = inlined_call_operand.vmem [shape: f32[1,9,1024], index: 1, kind: input, shape index: {}]   ;;  %s4012_s2 = inlined_call_operand.vmem [shape: f32[1,1,1024], index: 2, kind: input, shape index: {}]   ;;  %s4013_s3 = inlined_call_operand.vmem [shape: f32[2,1,16,1024], index: 3, kind: output, shape index: {}]  }
   0x1   :  { %s2194_s14 = smov 0  }
   0x2 LB: > { %s22_s15 = sadd.s32 1, %s2163_s13  ;;  %p2103_p0 = scmp.ge.s32.totalorder %s2167_s14, 1  ;;  %s2167_s14 = sphi %s2194_s14, %s13_s14   ;;  %s2163_s13 = sphi %s2192_s13, %s4398_s13   ;;  %s2159_s12 = sphi %s2190_s12, %s4397_s12  }
   0x3   : > { %p23_p1 = scmp.ge.s32.totalorder %s22_s15, 2  ;;  %p176_p2 = scmp.lt.s32.totalorder %s2167_s14, 3 }
   0x5   : > { %s4400_s15 = smov (%p23_p1, %s22_s15), 0  ;;  %p177_p3 = pnand %p2103_p0, %p176_p2 }
   0x7   : > { %180 = sbr.rel (%p177_p3) target bundleno = 419 (0x1a3), region = 32 }
   0xe   : > { %p217_p4 = scmp.lt.s32.totalorder %s2159_s12, 1  ;;  %vm292_vm0 = vcmask 1040384   ;;  %s2169_s20 = smov 64   ;;  %v470_v18 = vlaneseq  ;;  %v2261_v35 = vld [vmem:[%s4011_s1] sm:$0xff]  ;;  %vm413_vm1 = vcmask 523264   ;;  %vm918_vm2 = vcmask 1046528  }
   0xf   : > { %vm1478_vm3 = vcmask 1045504  }
  0x10   : > { %s4402_s12 = smov (!%p217_p4, %s2159_s12), 1  ;;  %v2241_v25 = vshrl.u32 %v470_v18, 7  ;;  %v2379_v18 = vld [vmem:[%s4011_s1 + $0x30] sm:$0xff] }
  0x11   : > { %s2118_s16 = sshll.u32 %s4402_s12, 7  ;;  %4142 = vst [vmem:[#allocation14_spill] sm:$0xff] %v2379_v18 }
  0x12   : > { %s2216_s19 = scalar_lea.vmem %s4010_s0, %s2118_s16  ;;  %v2247_v27 = vsub.s32 3, %v2241_v25  ;;  %v2250_v28 = vsub.s32 6, %v2241_v25  ;;  %v2256_v34 = vsub.s32 0, %v2241_v25  ;;  %v2276_v42 = vsub.s32 2, %v2241_v25  ;;  %s3834_s6 = scalar_lea.vmem %s4013_s3, %s2118_s16 }
  0x13   : > { %v2219_v0 = vld [vmem:[%s2216_s19 + $0x10] sm:$0xff]  ;;  %v244_v1 = vld [vmem:[%s2216_s19] sm:$0xff]  ;;  %v247_v2 = vld [vmem:[%s2216_s19 + $0x18] sm:$0xff]  ;;  %v2285_v46 = vsub.s32 5, %v2241_v25 }
  0x14   : > { %v295_v3 = vrot.slane %v2219_v0, 7  ;;  %v293_v4 = vrot.slane %v244_v1, 7  ;;  %v296_v5 = vrot.slane %v247_v2, 7  ;;  %v245_v6 = vld [vmem:[%s2216_s19 + $0x8] sm:$0xff]  ;;  %v248_v9 = vld [vmem:[%s2216_s19 + $0x20] sm:$0xff]  ;;  %v251_v16 = vld [vmem:[%s2216_s19 + $0x38] sm:$0xff]  ;;  %v2267_v38 = vrot.slane %v2261_v35, %v2247_v27 }
  0x15   : > { %v294_v7 = vrot.slane %v245_v6, 7  ;;  %v249_v8 = vld [vmem:[%s2216_s19 + $0x28] sm:$0xff]  ;;  %v297_v15 = vrot.slane %v248_v9, 7  ;;  %v250_v17 = vld [vmem:[%s2216_s19 + $0x30] sm:$0xff]  ;;  %v300_v19 = vrot.slane %v251_v16, 7  ;;  %v252_v24 = vld [vmem:[%s2216_s19 + $0x40] sm:$0xff]  ;;  %v2271_v39 = vrot.slane %v2261_v35, %v2250_v28 }
  0x16   : > { %v335_v10 = vsel %vm292_vm0, 0.0, %v295_v3  ;;  %v333_v11 = vsel %vm292_vm0, 0.0, %v293_v4  ;;  %v336_v12 = vsel %vm292_vm0, 0.0, %v296_v5  ;;  %v298_v14 = vrot.slane %v249_v8, 7  ;;  %v253_v23 = vld [vmem:[%s2216_s19 + $0x48] sm:$0xff]  ;;  %4130 = vst [vmem:[#allocation2_spill] sm:$0xff] %v2247_v27 }
  0x17   : > { %369 = vrot.lane.b32.xlu1 %v335_v10, %s2169_s20  ;;  %365 = vrot.lane.b32.xlu0 %v333_v11, %s2169_s20  ;;  %v334_v13 = vsel %vm292_vm0, 0.0, %v294_v7  ;;  %v337_v21 = vsel %vm292_vm0, 0.0, %v297_v15  ;;  %v299_v22 = vrot.slane %v250_v17, 7  ;;  %v340_v26 = vsel %vm292_vm0, 0.0, %v300_v19  ;;  %4131 = vst [vmem:[#allocation3_spill] sm:$0xff] %v2250_v28  ;;  %v255_v32 = vld [vmem:[%s2216_s19 + $0x58] sm:$0xff] }
  0x18   : > { %v338_v20 = vsel %vm292_vm0, 0.0, %v298_v14  ;;  %v303_v30 = vrot.slane %v253_v23, 7  ;;  %v301_v31 = vrot.slane %v252_v24, 7  ;;  %v254_v33 = vld [vmem:[%s2216_s19 + $0x50] sm:$0xff]  ;;  %v307_v36 = vrot.slane %v255_v32, 7  ;;  %4132 = vst [vmem:[#allocation4_spill] sm:$0xff] %v2267_v38 }
  0x19   : > { %v339_v29 = vsel %vm292_vm0, 0.0, %v299_v22  ;;  %v305_v37 = vrot.slane %v254_v33, 7  ;;  %4133 = vst [vmem:[#allocation5_spill] sm:$0xff] %v2276_v42  ;;  %v2280_v43 = vrot.slane %v2261_v35, %v2256_v34  ;;  %v257_v44 = vld [vmem:[%s2216_s19 + $0x68] sm:$0xff]  ;;  %v256_v45 = vld [vmem:[%s2216_s19 + $0x60] sm:$0xff]  ;;  %4134 = vst [vmem:[#allocation6_spill] sm:$0xff] %v2285_v46  ;;  %v2289_v47 = vrot.slane %v2261_v35, %v2276_v42 }
  0x1a   : > { %v304_v40 = vsel %vm292_vm0, %v294_v7, %v303_v30  ;;  %v302_v41 = vsel %vm292_vm0, %v293_v4, %v301_v31  ;;  %v308_v48 = vsel %vm292_vm0, %v296_v5, %v307_v36  ;;  %v311_v50 = vrot.slane %v257_v44, 7  ;;  %v259_v52 = vld [vmem:[%s2216_s19 + $0x78] sm:$0xff]  ;;  %v258_v53 = vld [vmem:[%s2216_s19 + $0x70] sm:$0xff]  ;;  %v2331_v6 = vld [vmem:[%s4011_s1 + $0x8] sm:$0xff] }
  0x1b   : > { %371 = vrot.lane.b32.xlu1 %v336_v12, %s2169_s20  ;;  %367 = vrot.lane.b32.xlu0 %v334_v13, %s2169_s20  ;;  %4135 = vst [vmem:[#allocation7_spill] sm:$0xff] %v2289_v47  ;;  %v306_v49 = vsel %vm292_vm0, %v295_v3, %v305_v37  ;;  %v309_v51 = vrot.slane %v256_v45, 7  ;;  %v2299_v54 = vrot.slane %v2261_v35, %v2285_v46  ;;  %v315_v57 = vrot.slane %v259_v52, 7  ;;  %v2342_v9 = vld [vmem:[%s4011_s1 + $0x18] sm:$0xff]  ;;  %v2347_v10 = vld [vmem:[%s4011_s1 + $0x10] sm:$0xff] }
  0x1c   : > { %v312_v55 = vsel %vm292_vm0, %v298_v14, %v311_v50  ;;  %v313_v58 = vrot.slane %v258_v53, 7  ;;  %v342_v61 = vsel %vm292_vm0, %v303_v30, 0.0  ;;  %v341_v62 = vsel %vm292_vm0, %v301_v31, 0.0  ;;  %4137 = vst [vmem:[#allocation9_spill] sm:$0xff] %v2331_v6  ;;  %4138 = vst [vmem:[#allocation10_spill] sm:$0xff] %v2342_v9  ;;  %v2358_v13 = vld [vmem:[%s4011_s1 + $0x28] sm:$0xff] }
  0x1d   : > { %4136 = vst [vmem:[#allocation8_spill] sm:$0xff] %v2299_v54  ;;  %v310_v56 = vsel %vm292_vm0, %v297_v15, %v309_v51  ;;  %v316_v59 = vsel %vm292_vm0, %v300_v19, %v315_v57  ;;  %v344_v63 = vsel %vm292_vm0, %v307_v36, 0.0  ;;  %v343_v0 = vsel %vm292_vm0, %v305_v37, 0.0  ;;  %4139 = vst [vmem:[#allocation11_spill] sm:$0xff] %v2358_v13  ;;  %v2363_v14 = vld [vmem:[%s4011_s1 + $0x20] sm:$0xff]  ;;  %v2374_v17 = vld [vmem:[%s4011_s1 + $0x38] sm:$0xff] }
  0x1e   : > { %v314_v60 = vsel %vm292_vm0, %v299_v22, %v313_v58  ;;  %v346_v1 = vsel %vm292_vm0, %v311_v50, 0.0  ;;  %v345_v2 = vsel %vm292_vm0, %v309_v51, 0.0  ;;  %v2324_v3 = vsub.s32 1, %v2241_v25  ;;  %4140 = vst [vmem:[#allocation12_spill] sm:$0xff] %v2363_v14  ;;  %4141 = vst [vmem:[#allocation13_spill] sm:$0xff] %v2374_v17 }
  0x1f   : > { %375 = vrot.lane.b32.xlu1 %v338_v20, %s2169_s20  ;;  %373 = vrot.lane.b32.xlu0 %v337_v21, %s2169_s20  ;;  %v348_v4 = vsel %vm292_vm0, %v315_v57, 0.0  ;;  %v347_v5 = vsel %vm292_vm0, %v313_v58, 0.0  ;;  %v488_v21 = vsub.s32 4, %v2241_v25  ;;  %v500_v33 = vsub.s32 7, %v2241_v25 }
  0x20   : > { %v589_v7 = vrot.slane %v2331_v6, %v2324_v3  ;;  %v585_v8 = vrot.slane %v2261_v35, %v2324_v3  ;;  %v597_v11 = vrot.slane %v2342_v9, %v2324_v3  ;;  %v593_v12 = vrot.slane %v2347_v10, %v2324_v3 }
  0x21   : > { %v605_v15 = vrot.slane %v2358_v13, %v2324_v3  ;;  %v601_v16 = vrot.slane %v2363_v14, %v2324_v3  ;;  %v613_v19 = vrot.slane %v2374_v17, %v2324_v3  ;;  %v609_v20 = vrot.slane %v2379_v18, %v2324_v3 }
  0x22   : > { %v998_v22 = vrot.slane %v2331_v6, %v488_v21  ;;  %v994_v23 = vrot.slane %v2261_v35, %v488_v21  ;;  %v1006_v24 = vrot.slane %v2342_v9, %v488_v21  ;;  %v1010_v30 = vrot.slane %v2363_v14, %v488_v21 }
  0x23   : > { %379 = vrot.lane.b32.xlu1 %v340_v26, %s2169_s20  ;;  %377 = vrot.lane.b32.xlu0 %v339_v29, %s2169_s20  ;;  %v1002_v26 = vrot.slane %v2347_v10, %v488_v21  ;;  %v1014_v29 = vrot.slane %v2358_v13, %v488_v21  ;;  %v1022_v31 = vrot.slane %v2374_v17, %v488_v21 }
  0x24   : > { %v1018_v32 = vrot.slane %v2379_v18, %v488_v21  ;;  %v1558_v36 = vrot.slane %v2331_v6, %v500_v33  ;;  %v1554_v37 = vrot.slane %v2261_v35, %v500_v33  ;;  %v1574_v25 = vrot.slane %v2358_v13, %v500_v33 }
  0x25   : > { %v1570_v44 = vrot.slane %v2363_v14, %v500_v33  ;;  %v1582_v35 = vrot.slane %v2374_v17, %v500_v33  ;;  %v1578_v45 = vrot.slane %v2379_v18, %v500_v33 }
  0x27   : > { %383 = vrot.lane.b32.xlu1 %v304_v40, %s2169_s20  ;;  %381 = vrot.lane.b32.xlu0 %v302_v41, %s2169_s20  ;;  %v1566_v40 = vrot.slane %v2342_v9, %v500_v33  ;;  %v1562_v41 = vrot.slane %v2347_v10, %v500_v33 }
  0x2b   : > { %387 = vrot.lane.b32.xlu1 %v308_v48, %s2169_s20  ;;  %385 = vrot.lane.b32.xlu0 %v306_v49, %s2169_s20  ;;  %v2426_v48 = vld [vmem:[%s4012_s2] sm:$0xff] }
  0x2c   : > { %4143 = vst [vmem:[#allocation15_spill] sm:$0xff] %v2426_v48  ;;  %v473_v51 = vrot.slane %v2426_v48, %v2256_v34 }
  0x2f   : > { %391 = vrot.lane.b32.xlu1 %v312_v55, %s2169_s20  ;;  %389 = vrot.lane.b32.xlu0 %v310_v56, %s2169_s20  ;;  %v525_v55 = vrot.slane %v2331_v6, %v2256_v34 }
  0x33   : > { %395 = vrot.lane.b32.xlu1 %v316_v59, %s2169_s20  ;;  %393 = vrot.lane.b32.xlu0 %v314_v60, %s2169_s20  ;;  %v477_v59 = vrot.slane %v2426_v48, %v2324_v3 }
  0x37   : > { %399 = vrot.lane.b32.xlu1 %v342_v61, %s2169_s20  ;;  %397 = vrot.lane.b32.xlu0 %v341_v62, %s2169_s20  ;;  %v537_v62 = vrot.slane %v2363_v14, %v2256_v34 }
  0x3b   : > { %403 = vrot.lane.b32.xlu1 %v344_v63, %s2169_s20  ;;  %401 = vrot.lane.b32.xlu0 %v343_v0, %s2169_s20 }
  0x3f   : > { %407 = vrot.lane.b32.xlu1 %v346_v1, %s2169_s20  ;;  %405 = vrot.lane.b32.xlu0 %v345_v2, %s2169_s20  ;;  %v489_v2 = vrot.slane %v2426_v48, %v488_v21 }
  0x43   : > { %411 = vrot.lane.b32.xlu1 %v348_v4, %s2169_s20  ;;  %409 = vrot.lane.b32.xlu0 %v347_v5, %s2169_s20  ;;  %v549_v5 = vrot.slane %v2374_v17, %v2256_v34 }
  0x47   : > { %624 = vrot.lane.b32.xlu1 %v589_v7, %s2169_s20  ;;  %622 = vrot.lane.b32.xlu0 %v585_v8, %s2169_s20 }
  0x4b   : > { %628 = vrot.lane.b32.xlu1 %v597_v11, %s2169_s20  ;;  %626 = vrot.lane.b32.xlu0 %v593_v12, %s2169_s20 }
  0x4f   : > { %632 = vrot.lane.b32.xlu1 %v605_v15, %s2169_s20  ;;  %630 = vrot.lane.b32.xlu0 %v601_v16, %s2169_s20  ;;  %v501_v15 = vrot.slane %v2426_v48, %v500_v33 }
  0x53   : > { %636 = vrot.lane.b32.xlu1 %v613_v19, %s2169_s20  ;;  %634 = vrot.lane.b32.xlu0 %v609_v20, %s2169_s20 }
  0x57   : > { %1033 = vrot.lane.b32.xlu1 %v998_v22, %s2169_s20  ;;  %1031 = vrot.lane.b32.xlu0 %v994_v23, %s2169_s20 }
  0x5b   : > { %1037 = vrot.lane.b32.xlu1 %v1006_v24, %s2169_s20  ;;  %1035 = vrot.lane.b32.xlu0 %v1002_v26, %s2169_s20 }
  0x5f   : > { %1041 = vrot.lane.b32.xlu1 %v1014_v29, %s2169_s20  ;;  %1039 = vrot.lane.b32.xlu0 %v1010_v30, %s2169_s20 }
  0x63   : > { %1045 = vrot.lane.b32.xlu1 %v1022_v31, %s2169_s20  ;;  %1043 = vrot.lane.b32.xlu0 %v1018_v32, %s2169_s20 }
  0x67   : > { %1593 = vrot.lane.b32.xlu1 %v1558_v36, %s2169_s20  ;;  %1591 = vrot.lane.b32.xlu0 %v1554_v37, %s2169_s20 }
  0x6b   : > { %1597 = vrot.lane.b32.xlu1 %v1566_v40, %s2169_s20  ;;  %1595 = vrot.lane.b32.xlu0 %v1562_v41, %s2169_s20 }
  0x6f   : > { %1601 = vrot.lane.b32.xlu1 %v1574_v25, %s2169_s20  ;;  %1599 = vrot.lane.b32.xlu0 %v1570_v44, %s2169_s20 }
  0x73   : > { %1605 = vrot.lane.b32.xlu1 %v1582_v35, %s2169_s20  ;;  %1603 = vrot.lane.b32.xlu0 %v1578_v45, %s2169_s20  ;;  %v2524_v45 = vrot.slane %v2374_v17, %v2276_v42 }
  0x75   : > { %4153 = vst [vmem:[#allocation25_spill] sm:$0xff] %v2524_v45 }
  0x89   : > { %v2428_v49 = vpop.permute.xlu1 %369  ;;  %v366_v50 = vpop.permute.xlu0 %365 }
  0x8a   : > { %v2433_v52 = vsel %vm413_vm1, 0.0, %v366_v50 }
  0x8b   : > { %v550_v53 = vmul.f32 %v2280_v43, %v2433_v52 }
  0x8d   : > { %v2439_v56 = vpop.permute.xlu1 %371  ;;  %v2441_v57 = vpop.permute.xlu0 %367  ;;  %v2443_v58 = vadd.f32 %v550_v53, %v473_v51 }
  0x8e   : > { %v2449_v60 = vsel %vm413_vm1, %v366_v50, %v2441_v57 }
  0x8f   : > { %4144 = vst [vmem:[#allocation16_spill] sm:$0xff] %v2443_v58  ;;  %4145 = vst [vmem:[#allocation17_spill] sm:$0xff] %v2449_v60  ;;  %v551_v61 = vmul.f32 %v525_v55, %v2449_v60 }
  0x91   : > { %v2454_v63 = vpop.permute.xlu1 %375  ;;  %v2456_v0 = vpop.permute.xlu0 %373  ;;  %v2458_v1 = vadd.f32 %v551_v61, %v477_v59 }
  0x92   : > { %v2464_v3 = vsel %vm413_vm1, %v2439_v56, %v2456_v0 }
  0x93   : > { %4146 = vst [vmem:[#allocation18_spill] sm:$0xff] %v2458_v1  ;;  %4147 = vst [vmem:[#allocation19_spill] sm:$0xff] %v2464_v3  ;;  %v554_v4 = vmul.f32 %v537_v62, %v2464_v3 }
  0x95   : > { %v380_v7 = vpop.permute.xlu1 %379  ;;  %v2469_v8 = vpop.permute.xlu0 %377  ;;  %v2471_v11 = vadd.f32 %v554_v4, %v489_v2 }
  0x96   : > { %v2475_v12 = vsel %vm413_vm1, %v2469_v8, %v380_v7 }
  0x97   : > { %4148 = vst [vmem:[#allocation20_spill] sm:$0xff] %v2471_v11  ;;  %v557_v16 = vmul.f32 %v549_v5, %v2475_v12 }
  0x99   : > { %v2479_v19 = vpop.permute.xlu1 %383  ;;  %v382_v20 = vpop.permute.xlu0 %381  ;;  %v2488_v23 = vadd.f32 %v557_v16, %v501_v15  ;;  %v2548_v16 = vsel %vm413_vm1, %v380_v7, 0.0 }
  0x9a   : > { %v2483_v21 = vsel %vm413_vm1, %v382_v20, %v2479_v19  ;;  %v2486_v22 = vsel %vm413_vm1, 0.0, %v382_v20 }
  0x9b   : > { %4149 = vst [vmem:[#allocation21_spill] sm:$0xff] %v2488_v23  ;;  %v558_v24 = vmul.f32 %v2280_v43, %v2486_v22  ;;  %v559_v26 = vmul.f32 %v525_v55, %v2483_v21 }
  0x9d   : > { %v2493_v29 = vpop.permute.xlu1 %387  ;;  %v2495_v30 = vpop.permute.xlu0 %385  ;;  %v2497_v31 = vadd.f32 %v558_v24, %v473_v51  ;;  %v2499_v32 = vadd.f32 %v559_v26, %v477_v59 }
  0x9f   : > { %4150 = vst [vmem:[#allocation22_spill] sm:$0xff] %v2497_v31  ;;  %4151 = vst [vmem:[#allocation23_spill] sm:$0xff] %v2499_v32 }
  0xa1   : > { %v2501_v33 = vpop.permute.xlu1 %391  ;;  %v2503_v36 = vpop.permute.xlu0 %389 }
  0xa2   : > { %v2508_v37 = vsel %vm413_vm1, %v2493_v29, %v2503_v36 }
  0xa3   : > { %v562_v43 = vmul.f32 %v537_v62, %v2508_v37 }
  0xa5   : > { %v396_v40 = vpop.permute.xlu1 %395  ;;  %v2511_v41 = vpop.permute.xlu0 %393  ;;  %v2513_v25 = vadd.f32 %v562_v43, %v489_v2  ;;  %v2558_v43 = vmul.f32 %v2267_v38, %v2486_v22 }
  0xa6   : > { %v2516_v44 = vsel %vm413_vm1, %v396_v40, 0.0  ;;  %v2520_v35 = vsel %vm413_vm1, %v2511_v41, %v396_v40 }
  0xa7   : > { %4152 = vst [vmem:[#allocation24_spill] sm:$0xff] %v2513_v25  ;;  %v565_v50 = vmul.f32 %v549_v5, %v2520_v35  ;;  %v2529_v51 = vmul.f32 %v2524_v45, %v2516_v44  ;;  %v1277_v5 = vrot.slane %v2374_v17, %v2285_v46  ;;  %4159 = vst [vmem:[#allocation31_spill] sm:$0xff] %v2558_v43 }
  0xa9   : > { %4154 = vst [vmem:[#allocation26_spill] sm:$0xff] %v2529_v51  ;;  %v400_v53 = vpop.permute.xlu1 %399  ;;  %v398_v55 = vpop.permute.xlu0 %397  ;;  %v2531_v59 = vadd.f32 %v565_v50, %v501_v15  ;;  %v1285_v50 = vmul.f32 %v1277_v5, %v2548_v16  ;;  %v1293_v7 = vmul.f32 %v1277_v5, %v2516_v44 }
  0xaa   : > { %v2534_v61 = vsel %vm413_vm1, %v398_v55, %v400_v53  ;;  %v2537_v62 = vsel %vm413_vm1, 0.0, %v398_v55 }
  0xab   : > { %4155 = vst [vmem:[#allocation27_spill] sm:$0xff] %v2531_v59  ;;  %4156 = vst [vmem:[#allocation28_spill] sm:$0xff] %v2534_v61  ;;  %v886_v2 = vmul.f32 %v2267_v38, %v2537_v62  ;;  %v2543_v4 = vmul.f32 %v2271_v39, %v2537_v62  ;;  %v1347_v25 = vrot.slane %v1285_v50, 1  ;;  %v1348_v32 = vrot.slane %v1293_v7, 1 }
  0xad   : > { %v404_v15 = vpop.permute.xlu1 %403  ;;  %v402_v20 = vpop.permute.xlu0 %401  ;;  %v943_v40 = vrot.slane %v886_v2, 1  ;;  %v2575_v11 = vsel %vm918_vm2, %v1347_v25, %v1348_v32 }
  0xae   : > { %v2551_v24 = vsel %vm413_vm1, %v400_v53, %v402_v20  ;;  %v2554_v26 = vsel %vm413_vm1, %v402_v20, %v404_v15  ;;  %v4015_v20 = vrot.slane %v2558_v43, 1  ;;  %4163 = vst [vmem:[#allocation35_spill] sm:$0xff] %v2575_v11 }
  0xaf   : > { %4157 = vst [vmem:[#allocation29_spill] sm:$0xff] %v2551_v24  ;;  %4158 = vst [vmem:[#allocation30_spill] sm:$0xff] %v2554_v26 }
  0xb0   : > { %v2572_v2 = vsel %vm918_vm2, %v4015_v20, %v943_v40 }
  0xb1   : > { %v408_v55 = vpop.permute.xlu1 %407  ;;  %v406_v51 = vpop.permute.xlu0 %405  ;;  %4162 = vst [vmem:[#allocation34_spill] sm:$0xff] %v2572_v2 }
  0xb2   : > { %v2563_v59 = vsel %vm413_vm1, %v404_v15, %v406_v51  ;;  %v2566_v53 = vsel %vm413_vm1, %v406_v51, %v408_v55 }
  0xb3   : > { %4160 = vst [vmem:[#allocation32_spill] sm:$0xff] %v2563_v59  ;;  %4161 = vst [vmem:[#allocation33_spill] sm:$0xff] %v2566_v53 }
  0xb5   : > { %v412_v31 = vpop.permute.xlu1 %411  ;;  %v410_v23 = vpop.permute.xlu0 %409 }
  0xb6   : > { %v2578_v15 = vsel %vm413_vm1, %v412_v31, 0.0  ;;  %v2581_v51 = vsel %vm413_vm1, %v408_v55, %v410_v23  ;;  %v2584_v1 = vsel %vm413_vm1, %v410_v23, %v412_v31  ;;  %v2595_v23 = vsel %vm413_vm1, %v2428_v49, %v2439_v56 }
  0xb7   : > { %4164 = vst [vmem:[#allocation36_spill] sm:$0xff] %v2581_v51  ;;  %4165 = vst [vmem:[#allocation37_spill] sm:$0xff] %v2584_v1  ;;  %v1301_v50 = vmul.f32 %v1277_v5, %v2578_v15  ;;  %v2600_v31 = vsel %vm413_vm1, %v2441_v57, %v2428_v49  ;;  %v2611_v49 = vsel %vm413_vm1, %v2456_v0, %v2454_v63 }
  0xb8   : > { %4166 = vst [vmem:[#allocation38_spill] sm:$0xff] %v2595_v23  ;;  %4167 = vst [vmem:[#allocation39_spill] sm:$0xff] %v2600_v31  ;;  %v2625_v0 = vsel %vm413_vm1, %v2454_v63, %v2469_v8  ;;  %v2651_v63 = vsel %vm413_vm1, %v2495_v30, %v2493_v29 }
  0xb9   : > { %v625_v7 = vpop.permute.xlu1 %624  ;;  %v623_v43 = vpop.permute.xlu0 %622  ;;  %4168 = vst [vmem:[#allocation40_spill] sm:$0xff] %v2611_v49  ;;  %4170 = vst [vmem:[#allocation42_spill] sm:$0xff] %v2625_v0 }
  0xba   : > { %v638_v40 = vsel %vm413_vm1, %v623_v43, %v625_v7  ;;  %v654_v20 = vmul.f32 %v623_v43, %v2433_v52 }
  0xbb   : > { %v655_v25 = vmul.f32 %v638_v40, %v2449_v60 }
  0xbc   : > { %690 = vrot.lane.b32.xlu0 %v654_v20, %s2169_s20 }
  0xbd   : > { %v629_v11 = vpop.permute.xlu1 %628  ;;  %692 = vrot.lane.b32.xlu1 %v655_v25, %s2169_s20  ;;  %v627_v55 = vpop.permute.xlu0 %626  ;;  %v1364_v25 = vrot.slane %v1301_v50, 1 }
  0xbe   : > { %v639_v5 = vsel %vm413_vm1, %v625_v7, %v627_v55  ;;  %v640_v2 = vsel %vm413_vm1, %v627_v55, %v629_v11 }
  0xbf   : > { %v656_v20 = vmul.f32 %v639_v5, %v2600_v31  ;;  %v657_v45 = vmul.f32 %v640_v2, %v2595_v23 }
  0xc1   : > { %v633_v58 = vpop.permute.xlu1 %632  ;;  %696 = vrot.lane.b32.xlu1 %v657_v45, %s2169_s20  ;;  %694 = vrot.lane.b32.xlu0 %v656_v20, %s2169_s20  ;;  %v631_v56 = vpop.permute.xlu0 %630  ;;  %v2620_v20 = vsel %vm918_vm2, %v1348_v32, %v1364_v25 }
  0xc2   : > { %v641_v57 = vsel %vm413_vm1, %v629_v11, %v631_v56  ;;  %v642_v7 = vsel %vm413_vm1, %v631_v56, %v633_v58  ;;  %4169 = vst [vmem:[#allocation41_spill] sm:$0xff] %v2620_v20 }
  0xc3   : > { %v658_v55 = vmul.f32 %v641_v57, %v2464_v3  ;;  %v659_v47 = vmul.f32 %v642_v7, %v2611_v49 }
  0xc5   : > { %v637_v50 = vpop.permute.xlu1 %636  ;;  %700 = vrot.lane.b32.xlu1 %v659_v47, %s2169_s20  ;;  %698 = vrot.lane.b32.xlu0 %v658_v55, %s2169_s20  ;;  %v635_v45 = vpop.permute.xlu0 %634  ;;  %v663_v47 = vmul.f32 %v623_v43, %v2486_v22 }
  0xc6   : > { %v643_v11 = vsel %vm413_vm1, %v633_v58, %v635_v45  ;;  %v644_v56 = vsel %vm413_vm1, %v635_v45, %v637_v50  ;;  %v662_v32 = vmul.f32 %v637_v50, %v2548_v16  ;;  %v2642_v58 = vsel %vm413_vm1, %v2479_v19, %v2495_v30 }
  0xc7   : > { %v660_v54 = vmul.f32 %v643_v11, %v2625_v0  ;;  %v661_v17 = vmul.f32 %v644_v56, %v2475_v12  ;;  %4171 = vst [vmem:[#allocation43_spill] sm:$0xff] %v2642_v58  ;;  %v666_v45 = vmul.f32 %v640_v2, %v2651_v63  ;;  %v667_v19 = vmul.f32 %v641_v57, %v2508_v37 }
  0xc9   : > { %704 = vrot.lane.b32.xlu1 %v661_v17, %s2169_s20  ;;  %702 = vrot.lane.b32.xlu0 %v660_v54, %s2169_s20  ;;  %v1034_v25 = vpop.permute.xlu1 %1033  ;;  %v2635_v55 = vpop.permute.xlu0 %1031  ;;  %v665_v17 = vmul.f32 %v639_v5, %v2642_v58  ;;  %v664_v54 = vmul.f32 %v638_v40, %v2483_v21  ;;  %v2658_v5 = vsel %vm413_vm1, %v2503_v36, %v2501_v33 }
  0xca   : > { %v2663_v40 = vsel %vm413_vm1, %v2501_v33, %v2511_v41  ;;  %v2667_v29 = vsel %vm413_vm1, %v2635_v55, %v1034_v25  ;;  %v668_v30 = vmul.f32 %v642_v7, %v2658_v5  ;;  %v1063_v36 = vmul.f32 %v2635_v55, %v2433_v52 }
  0xcb   : > { %4172 = vst [vmem:[#allocation44_spill] sm:$0xff] %v2663_v40  ;;  %v669_v2 = vmul.f32 %v643_v11, %v2663_v40  ;;  %v2677_v57 = vmul.f32 %v2635_v55, %v2486_v22  ;;  %v2687_v7 = vmul.f32 %v2667_v29, %v2483_v21  ;;  %v1082_v42 = vmul.f32 %v2667_v29, %v2534_v61 }
  0xcc   : > { %v1117_v20 = vrot.slane %v1063_v36, 1 }
  0xcd   : > { %708 = vrot.lane.b32.xlu1 %v663_v47, %s2169_s20  ;;  %706 = vrot.lane.b32.xlu0 %v662_v32, %s2169_s20  ;;  %v1038_v8 = vpop.permute.xlu1 %1037  ;;  %v1036_v43 = vpop.permute.xlu0 %1035  ;;  %v4036_v18 = vrot.slane %v2687_v7, 1 }
  0xce   : > { %v1048_v33 = vsel %vm413_vm1, %v1034_v25, %v1036_v43  ;;  %v2681_v41 = vsel %vm413_vm1, %v1036_v43, %v1038_v8 }
  0xcf   : > { %v1065_v11 = vmul.f32 %v1048_v33, %v2600_v31  ;;  %v1066_v25 = vmul.f32 %v2681_v41, %v2595_v23  ;;  %v2699_v43 = vmul.f32 %v2681_v41, %v2651_v63 }
  0xd1   : > { %712 = vrot.lane.b32.xlu1 %v665_v17, %s2169_s20  ;;  %710 = vrot.lane.b32.xlu0 %v664_v54, %s2169_s20  ;;  %v1042_v47 = vpop.permute.xlu1 %1041  ;;  %v1040_v32 = vpop.permute.xlu0 %1039  ;;  %v1064_v17 = vmul.f32 %v2667_v29, %v2449_v60  ;;  %v2695_v54 = vmul.f32 %v1048_v33, %v2642_v58  ;;  %v1123_v13 = vrot.slane %v1065_v11, 1  ;;  %v1126_v46 = vrot.slane %v1066_v25, 1 }
  0xd2   : > { %v2706_v38 = vsel %vm413_vm1, %v1040_v32, %v1042_v47  ;;  %v1146_v29 = vrot.slane %v1082_v42, 1 }
  0xd3   : > { %v1120_v28 = vrot.slane %v1064_v17, 1  ;;  %v4173_v9 = vrot.slane %v2695_v54, 1 }
  0xd5   : > { %716 = vrot.lane.b32.xlu1 %v667_v19, %s2169_s20  ;;  %714 = vrot.lane.b32.xlu0 %v666_v45, %s2169_s20  ;;  %v671_v45 = vmul.f32 %v637_v50, %v2516_v44  ;;  %v670_v19 = vmul.f32 %v644_v56, %v2520_v35  ;;  %v4039_v56 = vrot.slane %v2699_v43, 1  ;;  %v2713_v36 = vpop.permute.xlu1 %1045  ;;  %v1122_v25 = vsel %vm918_vm2, %v1120_v28, %v4036_v18 }
  0xd7   : > { %v1128_v14 = vsel %vm918_vm2, %v1126_v46, %v4039_v56  ;;  %v1081_v46 = vmul.f32 %v2635_v55, %v2537_v62  ;;  %v1083_v55 = vmul.f32 %v1048_v33, %v2551_v24  ;;  %v1084_v33 = vmul.f32 %v2681_v41, %v2554_v26 }
  0xd9   : > { %720 = vrot.lane.b32.xlu1 %v669_v2, %s2169_s20  ;;  %718 = vrot.lane.b32.xlu0 %v668_v30, %s2169_s20  ;;  %v1118_v2 = vrot.slane %v2677_v57, 1  ;;  %v1050_v30 = vsel %vm413_vm1, %v1038_v8, %v1040_v32  ;;  %v1044_v57 = vpop.permute.xlu0 %1043  ;;  %v1068_v32 = vmul.f32 %v2706_v38, %v2611_v49  ;;  %v1144_v48 = vrot.slane %v1081_v46, 1 }
  0xda   : > { %v1067_v8 = vmul.f32 %v1050_v30, %v2464_v3  ;;  %v2719_v17 = vmul.f32 %v1050_v30, %v2508_v37  ;;  %v1053_v50 = vsel %vm413_vm1, %v1044_v57, %v2713_v36 }
  0xdb   : > { %v1119_v11 = vsel %vm918_vm2, %v1117_v20, %v1118_v2  ;;  %v1125_v20 = vsel %vm918_vm2, %v1123_v13, %v4173_v9  ;;  %v1132_v18 = vrot.slane %v1068_v32, 1  ;;  %v2748_v6 = vmul.f32 %v1053_v50, %v2520_v35 }
  0xdc   : > { %v1129_v27 = vrot.slane %v1067_v8, 1  ;;  %v1130_v28 = vrot.slane %v2719_v17, 1  ;;  %v1071_v9 = vmul.f32 %v2713_v36, %v2548_v16  ;;  %v2758_v13 = vmul.f32 %v2713_v36, %v2516_v44 }
  0xdd   : > { %724 = vrot.lane.b32.xlu1 %v671_v45, %s2169_s20  ;;  %722 = vrot.lane.b32.xlu0 %v670_v19, %s2169_s20  ;;  %v2723_v45 = vmul.f32 %v2706_v38, %v2658_v5  ;;  %v1052_v19 = vsel %vm413_vm1, %v1042_v47, %v1044_v57  ;;  %v1139_v56 = vrot.slane %v2748_v6, 1  ;;  %v2780_v46 = vpop.permute.xlu0 %1591 }
  0xde   : > { %v1069_v57 = vmul.f32 %v1052_v19, %v2625_v0  ;;  %v1131_v32 = vsel %vm918_vm2, %v1129_v27, %v1130_v28 }
  0xdf   : > { %v1133_v47 = vrot.slane %v2723_v45, 1 }
  0xe0   : > { %v1135_v17 = vrot.slane %v1069_v57, 1  ;;  %v1141_v57 = vrot.slane %v1071_v9, 1 }
  0xe1   : > { %1162 = vrot.lane.b32.xlu0 %v1119_v11, %s2169_s20  ;;  %1164 = vrot.lane.b32.xlu1 %v1122_v25, %s2169_s20  ;;  %v1070_v11 = vmul.f32 %v1053_v50, %v2475_v12  ;;  %v2745_v25 = vmul.f32 %v1052_v19, %v2663_v40  ;;  %v1134_v8 = vsel %vm918_vm2, %v1132_v18, %v1133_v47 }
  0xe5   : > { %1168 = vrot.lane.b32.xlu1 %v1128_v14, %s2169_s20  ;;  %1166 = vrot.lane.b32.xlu0 %v1125_v20, %s2169_s20  ;;  %v1136_v14 = vrot.slane %v2745_v25, 1  ;;  %v1138_v20 = vrot.slane %v1070_v11, 1  ;;  %v1142_v11 = vrot.slane %v2758_v13, 1  ;;  %v1594_v25 = vpop.permute.xlu1 %1593  ;;  %v1150_v13 = vrot.slane %v1084_v33, 1 }
  0xe7   : > { %v1140_v27 = vsel %vm918_vm2, %v1138_v20, %v1139_v56  ;;  %v1137_v18 = vsel %vm918_vm2, %v1135_v17, %v1136_v14  ;;  %v1145_v20 = vsel %vm918_vm2, %v1118_v2, %v1144_v48  ;;  %v1143_v9 = vsel %vm918_vm2, %v1141_v57, %v1142_v11 }
  0xe8   : > { %v4174_v17 = vrot.slane %v2687_v7, 1  ;;  %v1088_v7 = vmul.f32 %v1053_v50, %v2584_v1  ;;  %v1089_v57 = vmul.f32 %v2713_v36, %v2578_v15  ;;  %v2813_v50 = vmul.f32 %v2271_v39, %v2486_v22 }
  0xe9   : > { %1172 = vrot.lane.b32.xlu1 %v1134_v8, %s2169_s20  ;;  %1170 = vrot.lane.b32.xlu0 %v1131_v32, %s2169_s20  ;;  %v1148_v8 = vrot.slane %v1083_v55, 1  ;;  %v1085_v32 = vmul.f32 %v1050_v30, %v2563_v59  ;;  %v1087_v55 = vmul.f32 %v1052_v19, %v2581_v51  ;;  %v4175_v30 = vrot.slane %v2695_v54, 1  ;;  %v1598_v2 = vpop.permute.xlu1 %1597 }
  0xea   : > { %v1147_v41 = vsel %vm918_vm2, %v4174_v17, %v1146_v29  ;;  %v4176_v19 = vrot.slane %v2699_v43, 1  ;;  %4177 = vst [vmem:[#allocation45_spill] sm:$0xff] %v2813_v50  ;;  %v1158_v36 = vrot.slane %v1088_v7, 1  ;;  %v2819_v43 = vmul.f32 %v2780_v46, %v2486_v22 }
  0xeb   : > { %v1152_v42 = vrot.slane %v1085_v32, 1  ;;  %v1149_v48 = vsel %vm918_vm2, %v4175_v30, %v1148_v8  ;;  %v2807_v8 = vsel %vm413_vm1, %v2780_v46, %v1594_v25  ;;  %v1160_v17 = vrot.slane %v1089_v57, 1  ;;  %v2866_v57 = vld [vmem:[%s4011_s1 + $0x78] ss:$0 sm:$0xff] }
  0xec   : > { %v1151_v54 = vsel %vm918_vm2, %v4176_v19, %v1150_v13  ;;  %v2835_v22 = vmul.f32 %v2807_v8, %v2483_v21  ;;  %v1159_v7 = vsel %vm918_vm2, %v1139_v56, %v1158_v36  ;;  %v2872_v19 = vmul.f32 %v2866_v57, %v2516_v44 }
  0xed   : > { %1176 = vrot.lane.b32.xlu1 %v1140_v27, %s2169_s20  ;;  %1174 = vrot.lane.b32.xlu0 %v1137_v18, %s2169_s20  ;;  %v1086_v27 = vmul.f32 %v2706_v38, %v2566_v53  ;;  %v1596_v18 = vpop.permute.xlu0 %1595  ;;  %v1156_v38 = vrot.slane %v1087_v55, 1  ;;  %v1153_v29 = vsel %vm918_vm2, %v1130_v28, %v1152_v42  ;;  %v1623_v28 = vmul.f32 %v2780_v46, %v2433_v52 }
  0xee   : > { %v2822_v32 = vsel %vm413_vm1, %v1594_v25, %v1596_v18  ;;  %v1624_v42 = vmul.f32 %v2807_v8, %v2449_v60  ;;  %v1503_v25 = vrot.slane %v2543_v4, 2  ;;  %4178 = vst [vmem:[#allocation46_spill] sm:$0xff] %v2872_v19  ;;  %v1861_v6 = vmul.f32 %v2866_v57, %v2578_v15 }
  0xef   : > { %v1154_v33 = vrot.slane %v1086_v27, 1  ;;  %v1625_v45 = vmul.f32 %v2822_v32, %v2600_v31  ;;  %v2847_v55 = vmul.f32 %v2822_v32, %v2642_v58 }
  0xf1   : > { %1180 = vrot.lane.b32.xlu1 %v1145_v20, %s2169_s20  ;;  %1178 = vrot.lane.b32.xlu0 %v1143_v9, %s2169_s20  ;;  %v2825_v20 = vsel %vm413_vm1, %v1596_v18, %v1598_v2  ;;  %v1602_v9 = vpop.permute.xlu1 %1601  ;;  %v1600_v13 = vpop.permute.xlu0 %1599  ;;  %v1155_v27 = vsel %vm918_vm2, %v1133_v47, %v1154_v33  ;;  %v1161_v18 = vsel %vm918_vm2, %v1142_v11, %v1160_v17  ;;  %v1677_v33 = vrot.slane %v1623_v28, 2 }
  0xf2   : > { %v1626_v47 = vmul.f32 %v2825_v20, %v2595_v23  ;;  %v2851_v4 = vmul.f32 %v2825_v20, %v2651_v63  ;;  %v2854_v30 = vsel %vm413_vm1, %v1598_v2, %v1600_v13  ;;  %v4046_v2 = vrot.slane %v2835_v22, 2 }
  0xf3   : > { %v1683_v36 = vrot.slane %v1625_v45, 2  ;;  %v1684_v28 = vrot.slane %v2847_v55, 2  ;;  %v2890_v17 = vmul.f32 %v2854_v30, %v2508_v37 }
  0xf5   : > { %1184 = vrot.lane.b32.xlu1 %v1149_v48, %s2169_s20  ;;  %1182 = vrot.lane.b32.xlu0 %v1147_v41, %s2169_s20  ;;  %v1157_v41 = vsel %vm918_vm2, %v1136_v14, %v1156_v38  ;;  %v4044_v14 = vrot.slane %v2813_v50, 2  ;;  %v2857_v48 = vsel %vm413_vm1, %v1600_v13, %v1602_v9  ;;  %v4045_v38 = vrot.slane %v2819_v43, 2  ;;  %v2876_v11 = vpop.permute.xlu1 %1605  ;;  %v1604_v56 = vpop.permute.xlu0 %1603 }
  0xf6   : > { %v1627_v13 = vmul.f32 %v2854_v30, %v2464_v3  ;;  %v1612_v45 = vsel %vm413_vm1, %v1602_v9, %v1604_v56  ;;  %v1613_v55 = vsel %vm413_vm1, %v1604_v56, %v2876_v11  ;;  %v4050_v9 = vrot.slane %v2872_v19, 2 }
  0xf7   : > { %v1629_v56 = vmul.f32 %v1612_v45, %v2625_v0  ;;  %v3101_v19 = vmul.f32 %v2271_v39, %v2433_v52 }
  0xf9   : > { %1188 = vrot.lane.b32.xlu1 %v1153_v29, %s2169_s20  ;;  %1186 = vrot.lane.b32.xlu0 %v1151_v54, %s2169_s20  ;;  %v1680_v29 = vrot.slane %v1624_v42, 2  ;;  %v2883_v54 = vsel %vm1478_vm3, %v4044_v14, %v1503_v25  ;;  %v1628_v42 = vmul.f32 %v2857_v48, %v2611_v49  ;;  %v2897_v25 = vmul.f32 %v2857_v48, %v2658_v5 }
  0xfa   : > { %4179 = vst [vmem:[#allocation47_spill] sm:$0xff] %v2883_v54  ;;  %v1689_v14 = vrot.slane %v1627_v13, 2  ;;  %v1630_v54 = vmul.f32 %v1613_v55, %v2475_v12  ;;  %v1685_v13 = vsel %vm1478_vm3, %v1683_v36, %v1684_v28  ;;  %v1631_v36 = vmul.f32 %v2876_v11, %v2548_v16 }
  0xfc   : > { %v1698_v50 = vrot.slane %v1630_v54, 2 }
  0xfd   : > { %1192 = vrot.lane.b32.xlu1 %v1157_v41, %s2169_s20  ;;  %1190 = vrot.lane.b32.xlu0 %v1155_v27, %s2169_s20  ;;  %v1686_v41 = vrot.slane %v1626_v47, 2  ;;  %v1682_v47 = vsel %vm1478_vm3, %v1680_v29, %v4046_v2  ;;  %v1690_v27 = vrot.slane %v2890_v17, 2  ;;  %v1692_v29 = vrot.slane %v1628_v42, 2 }
  0xfe   : > { %v1641_v17 = vmul.f32 %v2780_v46, %v2537_v62  ;;  %v1695_v42 = vrot.slane %v1629_v56, 2  ;;  %v1643_v46 = vmul.f32 %v2822_v32, %v2551_v24 }
  0xff   : > { %v1691_v62 = vsel %vm1478_vm3, %v1689_v14, %v1690_v27  ;;  %v1644_v14 = vmul.f32 %v2825_v20, %v2554_v26 }
 0x100   : > { %v1704_v56 = vrot.slane %v1641_v17, 2  ;;  %v1708_v32 = vrot.slane %v1643_v46, 2  ;;  %v1649_v46 = vmul.f32 %v2876_v11, %v2578_v15 }
 0x101   : > { %1196 = vrot.lane.b32.xlu1 %v1161_v18, %s2169_s20  ;;  %1194 = vrot.lane.b32.xlu0 %v1159_v7, %s2169_s20  ;;  %v1679_v18 = vsel %vm1478_vm3, %v1677_v33, %v4045_v38  ;;  %v1924_v7 = vrot.slane %v1861_v6, 2  ;;  %v1638_v33 = vmul.f32 %v1612_v45, %v2663_v40  ;;  %v2916_v38 = vmul.f32 %v1613_v55, %v2520_v35 }
 0x103   : > { %v2930_v2 = vsel %vm1478_vm3, %v4050_v9, %v1924_v7  ;;  %v1699_v40 = vrot.slane %v2916_v38, 2  ;;  %v4204_v9 = vld [vmem:[#allocation13_spill] sm:$0xff] }
 0x104   : > { %4181 = vst [vmem:[#allocation48_spill] sm:$0xff] %v2930_v2 }
 0x105   : > { %1722 = vrot.lane.b32.xlu0 %v1679_v18, %s2169_s20  ;;  %1724 = vrot.lane.b32.xlu1 %v1682_v47, %s2169_s20  ;;  %v1693_v18 = vrot.slane %v2897_v25, 2  ;;  %v4180_v47 = vrot.slane %v2851_v4, 2  ;;  %v1696_v25 = vrot.slane %v1638_v33, 2  ;;  %v1700_v54 = vsel %vm1478_vm3, %v1698_v50, %v1699_v40 }
 0x106   : > { %v1701_v33 = vrot.slane %v1631_v36, 2  ;;  %v4182_v50 = vrot.slane %v2819_v43, 2  ;;  %v1646_v36 = vmul.f32 %v2857_v48, %v2566_v53  ;;  %v4183_v43 = vrot.slane %v2835_v22, 2 }
 0x107   : > { %v1688_v6 = vsel %vm1478_vm3, %v1686_v41, %v4180_v47  ;;  %v1640_v41 = vmul.f32 %v2876_v11, %v2516_v44  ;;  %v1694_v47 = vsel %vm1478_vm3, %v1692_v29, %v1693_v18  ;;  %v1697_v7 = vsel %vm1478_vm3, %v1695_v42, %v1696_v25  ;;  %v4187_v11 = vld [vmem:[#allocation9_spill] sm:$0xff] }
 0x108   : > { %v1642_v29 = vmul.f32 %v2807_v8, %v2534_v61  ;;  %v1710_v8 = vrot.slane %v1644_v14, 2  ;;  %v2981_v22 = vrot.slane %v2347_v10, %v2256_v34  ;;  %v1720_v14 = vrot.slane %v1649_v46, 2 }
 0x109   : > { %1728 = vrot.lane.b32.xlu1 %v1688_v6, %s2169_s20  ;;  %1726 = vrot.lane.b32.xlu0 %v1685_v13, %s2169_s20  ;;  %v1702_v44 = vrot.slane %v1640_v41, 2  ;;  %v1645_v6 = vmul.f32 %v2854_v30, %v2563_v59  ;;  %v1705_v13 = vsel %vm1478_vm3, %v4182_v50, %v1704_v56  ;;  %v1647_v41 = vmul.f32 %v1612_v45, %v2581_v51  ;;  %v4185_v56 = vld [vmem:[#allocation5_spill] sm:$0xff]  ;;  %v4220_v59 = vld [vmem:[#allocation16_spill] sm:$0xff] }
 0x10a   : > { %v1706_v42 = vrot.slane %v1642_v29, 2  ;;  %v1709_v30 = vsel %vm1478_vm3, %v1684_v28, %v1708_v32  ;;  %v4184_v45 = vrot.slane %v2851_v4, 2  ;;  %v2993_v4 = vrot.slane %v2347_v10, %v4185_v56 }
 0x10b   : > { %v1703_v17 = vsel %vm1478_vm3, %v1701_v33, %v1702_v44  ;;  %v1712_v20 = vrot.slane %v1645_v6, 2  ;;  %v1716_v48 = vrot.slane %v1647_v41, 2  ;;  %v4186_v33 = vld [vmem:[#allocation15_spill] sm:$0xff]  ;;  %v552_v39 = vmul.f32 %v2981_v22, %v2600_v31 }
 0x10c   : > { %v1711_v28 = vsel %vm1478_vm3, %v4184_v45, %v1710_v8  ;;  %v2985_v15 = vrot.slane %v4186_v33, %v4185_v56  ;;  %v4190_v8 = vld [vmem:[#allocation12_spill] sm:$0xff] }
 0x10d   : > { %1732 = vrot.lane.b32.xlu1 %v1694_v47, %s2169_s20  ;;  %1730 = vrot.lane.b32.xlu0 %v1691_v62, %s2169_s20  ;;  %v1707_v47 = vsel %vm1478_vm3, %v4183_v43, %v1706_v42  ;;  %v1714_v62 = vrot.slane %v1646_v36, 2  ;;  %v1717_v6 = vsel %vm1478_vm3, %v1696_v25, %v1716_v48  ;;  %v3013_v36 = vrot.slane %v4190_v8, %v4185_v56 }
 0x10f   : > { %v1715_v50 = vsel %vm1478_vm3, %v1693_v18, %v1714_v62  ;;  %v4193_v18 = vld [vmem:[#allocation11_spill] sm:$0xff] }
 0x110   : > { %v3021_v41 = vrot.slane %v4193_v18, %v2256_v34  ;;  %v4197_v62 = vld [vmem:[#allocation3_spill] sm:$0xff] }
 0x111   : > { %1736 = vrot.lane.b32.xlu1 %v1700_v54, %s2169_s20  ;;  %1734 = vrot.lane.b32.xlu0 %v1697_v7, %s2169_s20  ;;  %v1648_v54 = vmul.f32 %v1613_v55, %v2584_v1  ;;  %v1713_v7 = vsel %vm1478_vm3, %v1690_v27, %v1712_v20  ;;  %v2989_v55 = vrot.slane %v4187_v11, %v4185_v56  ;;  %v4188_v27 = vld [vmem:[#allocation2_spill] sm:$0xff] }
 0x112   : > { %v2997_v29 = vrot.slane %v4186_v33, %v4188_v27  ;;  %v4191_v20 = vld [vmem:[#allocation6_spill] sm:$0xff]  ;;  %v3033_v46 = vrot.slane %v4186_v33, %v4197_v62  ;;  %v3041_v48 = vrot.slane %v4187_v11, %v4188_v27  ;;  %v3067_v38 = vrot.slane %v4190_v8, %v4188_v27 }
 0x113   : > { %v1718_v32 = vrot.slane %v1648_v54, 2  ;;  %v3017_v25 = vrot.slane %v4186_v33, %v4191_v20  ;;  %v3097_v2 = vrot.slane %v4204_v9, %v4188_v27  ;;  %v3105_v53 = vrot.slane %v4187_v11, %v4197_v62 }
 0x114   : > { %v3109_v26 = vrot.slane %v2347_v10, %v4197_v62 }
 0x115   : > { %1740 = vrot.lane.b32.xlu1 %v1705_v13, %s2169_s20  ;;  %1738 = vrot.lane.b32.xlu0 %v1703_v17, %s2169_s20  ;;  %v4189_v13 = vld [vmem:[#allocation10_spill] sm:$0xff]  ;;  %4192 = vst [vmem:[#allocation5_spill] sm:$0xff] %v3017_v25  ;;  %v1719_v45 = vsel %vm1478_vm3, %v1699_v40, %v1718_v32  ;;  %4206 = vst [vmem:[#allocation3_spill] sm:$0xff] %v3105_v53 }
 0x116   : > { %v3005_v17 = vrot.slane %v4189_v13, %v2256_v34  ;;  %v3009_v42 = vrot.slane %v4189_v13, %v4185_v56  ;;  %v3063_v33 = vrot.slane %v4189_v13, %v4188_v27  ;;  %v3071_v40 = vrot.slane %v4189_v13, %v4191_v20 }
 0x118   : > { %4199 = vst [vmem:[#allocation10_spill] sm:$0xff] %v3063_v33  ;;  %v809_v53 = vmul.f32 %v3009_v42, %v2464_v3  ;;  %v3176_v51 = vmul.f32 %v3063_v33, %v2595_v23 }
 0x119   : > { %1744 = vrot.lane.b32.xlu1 %v1709_v30, %s2169_s20  ;;  %1742 = vrot.lane.b32.xlu0 %v1707_v47, %s2169_s20  ;;  %v4194_v30 = vld [vmem:[#allocation14_spill] sm:$0xff]  ;;  %v3029_v47 = vrot.slane %v4193_v18, %v4185_v56 }
 0x11a   : > { %v3025_v43 = vrot.slane %v4194_v30, %v2256_v34  ;;  %v3037_v54 = vrot.slane %v4194_v30, %v4185_v56  ;;  %v3045_v34 = vrot.slane %v2347_v10, %v4188_v27  ;;  %v3057_v56 = vrot.slane %v2347_v10, %v4191_v20  ;;  %4205 = vst [vmem:[#allocation14_spill] sm:$0xff] %v3101_v19 }
 0x11b   : > { %4196 = vst [vmem:[#allocation9_spill] sm:$0xff] %v3029_v47  ;;  %v3083_v32 = vrot.slane %v4194_v30, %v4188_v27  ;;  %v3129_v10 = vrot.slane %v4193_v18, %v4197_v62 }
 0x11c   : > { %4195 = vst [vmem:[#allocation15_spill] sm:$0xff] %v3025_v43  ;;  %4198 = vst [vmem:[#allocation2_spill] sm:$0xff] %v3037_v54 }
 0x11d   : > { %1748 = vrot.lane.b32.xlu1 %v1713_v7, %s2169_s20  ;;  %1746 = vrot.lane.b32.xlu0 %v1711_v28, %s2169_s20  ;;  %v1721_v7 = vsel %vm1478_vm3, %v1702_v44, %v1720_v14  ;;  %v3053_v28 = vrot.slane %v4187_v11, %v4191_v20  ;;  %v3075_v44 = vrot.slane %v4190_v8, %v4191_v20  ;;  %v4210_v11 = vld [vmem:[#allocation8_spill] sm:$0xff] }
 0x11e   : > { %v3079_v14 = vrot.slane %v4193_v18, %v4188_v27  ;;  %v3117_v27 = vrot.slane %v4190_v8, %v4197_v62  ;;  %4211 = vst [vmem:[#allocation50_spill] sm:$0xff] %v3129_v10  ;;  %v3135_v8 = vmul.f32 %v3045_v34, %v2600_v31 }
 0x11f   : > { %4200 = vst [vmem:[#allocation12_spill] sm:$0xff] %v3075_v44  ;;  %v3149_v10 = vmul.f32 %v3053_v28, %v2600_v31 }
 0x120   : > { %4209 = vst [vmem:[#allocation49_spill] sm:$0xff] %v3117_v27  ;;  %v3143_v27 = vrot.slane %v4204_v9, %v4197_v62  ;;  %v3158_v9 = vmul.f32 %v2993_v4, %v2595_v23 }
 0x121   : > { %1752 = vrot.lane.b32.xlu1 %v1717_v6, %s2169_s20  ;;  %1750 = vrot.lane.b32.xlu0 %v1715_v50, %s2169_s20  ;;  %v3087_v6 = vrot.slane %v4193_v18, %v4191_v20  ;;  %v4202_v50 = vld [vmem:[#allocation4_spill] sm:$0xff]  ;;  %4214 = vst [vmem:[#allocation53_spill] sm:$0xff] %v3149_v10  ;;  %v4222_v10 = vld [vmem:[#allocation25_spill] sm:$0xff] }
 0x122   : > { %4207 = vst [vmem:[#allocation4_spill] sm:$0xff] %v3109_v26  ;;  %v3139_v26 = vrot.slane %v4194_v30, %v4197_v62  ;;  %4213 = vst [vmem:[#allocation52_spill] sm:$0xff] %v3143_v27  ;;  %v3199_v27 = vmul.f32 %v3037_v54, %v2475_v12 }
 0x123   : > { %4201 = vst [vmem:[#allocation6_spill] sm:$0xff] %v3087_v6  ;;  %v874_v6 = vmul.f32 %v3067_v38, %v2464_v3 }
 0x124   : > { %4212 = vst [vmem:[#allocation51_spill] sm:$0xff] %v3139_v26  ;;  %4221 = vst [vmem:[#allocation16_spill] sm:$0xff] %v3199_v27 }
 0x125   : > { %1756 = vrot.lane.b32.xlu1 %v1721_v7, %s2169_s20  ;;  %1754 = vrot.lane.b32.xlu0 %v1719_v45, %s2169_s20  ;;  %v870_v7 = vmul.f32 %v4202_v50, %v2433_v52  ;;  %v3093_v45 = vrot.slane %v4194_v30, %v4191_v20  ;;  %v3113_v20 = vrot.slane %v4189_v13, %v4197_v62 }
 0x126   : > { %v553_v52 = vmul.f32 %v3005_v17, %v2595_v23  ;;  %v3125_v50 = vmul.f32 %v4210_v11, %v2449_v60  ;;  %v871_v13 = vmul.f32 %v3041_v48, %v2449_v60  ;;  %v807_v30 = vmul.f32 %v2989_v55, %v2600_v31 }
 0x127   : > { %4203 = vst [vmem:[#allocation11_spill] sm:$0xff] %v3093_v45  ;;  %4208 = vst [vmem:[#allocation13_spill] sm:$0xff] %v3113_v20  ;;  %v555_v20 = vmul.f32 %v3021_v41, %v2611_v49  ;;  %v919_v18 = vrot.slane %v870_v7, 1  ;;  %v4215_v45 = vld [vmem:[#allocation7_spill] sm:$0xff]  ;;  %v3162_v62 = vmul.f32 %v3057_v56, %v2595_v23  ;;  %v3165_v7 = vadd.f32 %v552_v39, %v2985_v15 }
 0x128   : > { %v806_v1 = vmul.f32 %v4215_v45, %v2449_v60  ;;  %4216 = vst [vmem:[#allocation7_spill] sm:$0xff] %v3158_v9  ;;  %v569_v26 = vadd.f32 %v553_v52, %v2997_v29  ;;  %v810_v31 = vmul.f32 %v3013_v36, %v2611_v49  ;;  %v922_v60 = vrot.slane %v871_v13, 1 }
 0x129   : > { %4217 = vst [vmem:[#allocation54_spill] sm:$0xff] %v3162_v62  ;;  %4218 = vst [vmem:[#allocation55_spill] sm:$0xff] %v3165_v7  ;;  %v571_v7 = vadd.f32 %v555_v20, %v3017_v25  ;;  %v3181_v52 = vmul.f32 %v3041_v48, %v2483_v21  ;;  %v3188_v13 = vmul.f32 %v2866_v57, %v2548_v16 }
 0x12a   : > { %v556_v23 = vmul.f32 %v3025_v43, %v2625_v0  ;;  %v811_v25 = vmul.f32 %v3029_v47, %v2625_v0  ;;  %v3203_v57 = vmul.f32 %v4222_v10, %v2548_v16  ;;  %v3224_v16 = vmul.f32 %v4210_v11, %v2483_v21  ;;  %v4227_v11 = vld [vmem:[#allocation18_spill] sm:$0xff] }
 0x12b   : > { %4219 = vst [vmem:[#allocation56_spill] sm:$0xff] %v3188_v13  ;;  %v3208_v13 = vmul.f32 %v3071_v40, %v2464_v3  ;;  %v3229_v10 = vmul.f32 %v3063_v33, %v2651_v63  ;;  %v931_v43 = vrot.slane %v874_v6, 1  ;;  %v3248_v33 = vmul.f32 %v3083_v32, %v2625_v0 }
 0x12e   : > { %v691_v19 = vpop.permute.xlu0 %690 }
 0x12f   : > { %v693_v39 = vpop.permute.xlu1 %692 }
 0x130   : > { %v726_v9 = vsel %vm413_vm1, %v691_v19, %v693_v39  ;;  %v928_v19 = vrot.slane %v3176_v51, 1  ;;  %v3242_v51 = vadd.f32 %v556_v23, %v3033_v46 }
 0x131   : > { %v758_v24 = vadd.f32 %v726_v9, %v4220_v59  ;;  %v3212_v59 = vmul.f32 %v3075_v44, %v2611_v49  ;;  %v3216_v9 = vmul.f32 %v3079_v14, %v2611_v49  ;;  %v4225_v49 = vld [vmem:[#allocation31_spill] sm:$0xff] }
 0x132   : > { %v4226_v54 = vrot.slane %v4225_v49, 1  ;;  %4228 = vst [vmem:[#allocation31_spill] sm:$0xff] %v3242_v51  ;;  %v3252_v49 = vmul.f32 %v4215_v45, %v2483_v21  ;;  %v4099_v51 = vrot.slane %v3229_v10, 1 }
 0x133   : > { %v822_v20 = vadd.f32 %v806_v1, %v758_v24  ;;  %v3218_v27 = vpop.permute.xlu1 %696  ;;  %v3220_v62 = vpop.permute.xlu0 %694  ;;  %v3238_v24 = vmul.f32 %v3067_v38, %v2508_v37  ;;  %v934_v6 = vrot.slane %v3216_v9, 1  ;;  %v4231_v9 = vld [vmem:[#allocation20_spill] sm:$0xff] }
 0x134   : > { %4223 = vst [vmem:[#allocation25_spill] sm:$0xff] %v3218_v27  ;;  %4224 = vst [vmem:[#allocation57_spill] sm:$0xff] %v3220_v62  ;;  %v727_v3 = vsel %vm413_vm1, %v693_v39, %v3220_v62  ;;  %v921_v1 = vsel %vm918_vm2, %v919_v18, %v4226_v54  ;;  %v815_v62 = vmul.f32 %v2989_v55, %v2642_v58 }
 0x135   : > { %v759_v47 = vadd.f32 %v727_v3, %v4227_v11  ;;  %v3244_v44 = vadd.f32 %v921_v1, %v822_v20  ;;  %v4229_v20 = vrot.slane %v3181_v52, 1  ;;  %v3281_v18 = vmul.f32 %v2993_v4, %v2651_v63 }
 0x137   : > { %v823_v3 = vadd.f32 %v807_v30, %v759_v47  ;;  %v701_v11 = vpop.permute.xlu1 %700  ;;  %v699_v23 = vpop.permute.xlu0 %698  ;;  %v924_v1 = vsel %vm918_vm2, %v922_v60, %v4229_v20  ;;  %v3268_v47 = vmul.f32 %v3079_v14, %v2658_v5  ;;  %v560_v20 = vmul.f32 %v2981_v22, %v2642_v58 }
 0x138   : > { %v729_v45 = vsel %vm413_vm1, %v3218_v27, %v699_v23  ;;  %v730_v54 = vsel %vm413_vm1, %v699_v23, %v701_v11  ;;  %v561_v23 = vmul.f32 %v3005_v17, %v2651_v63  ;;  %v3293_v22 = vmul.f32 %v3053_v28, %v2642_v58 }
 0x139   : > { %4230 = vst [vmem:[#allocation18_spill] sm:$0xff] %v3268_v47  ;;  %v761_v30 = vadd.f32 %v729_v45, %v569_v26  ;;  %v762_v39 = vadd.f32 %v730_v54, %v4231_v9  ;;  %v3273_v60 = vadd.f32 %v924_v1, %v823_v3  ;;  %v3285_v26 = vmul.f32 %v3045_v34, %v2642_v58 }
 0x13a   : > { %v3297_v17 = vmul.f32 %v3097_v2, %v2520_v35  ;;  %v877_v27 = vmul.f32 %v3097_v2, %v2475_v12 }
 0x13b   : > { %v825_v54 = vadd.f32 %v809_v53, %v761_v30  ;;  %v826_v45 = vadd.f32 %v810_v31, %v762_v39  ;;  %v3287_v9 = vpop.permute.xlu1 %704  ;;  %v3289_v55 = vpop.permute.xlu0 %702  ;;  %v930_v53 = vsel %vm918_vm2, %v928_v19, %v4099_v51  ;;  %v4234_v31 = vrot.slane %v3238_v24, 1 }
 0x13c   : > { %4232 = vst [vmem:[#allocation20_spill] sm:$0xff] %v3287_v9  ;;  %4233 = vst [vmem:[#allocation58_spill] sm:$0xff] %v3289_v55  ;;  %v731_v4 = vsel %vm413_vm1, %v701_v11, %v3289_v55  ;;  %v4100_v39 = vrot.slane %v3268_v47, 1  ;;  %v576_v11 = vadd.f32 %v560_v20, %v2985_v15  ;;  %v4235_v55 = vrot.slane %v3224_v16, 1 }
 0x13d   : > { %v933_v3 = vsel %vm918_vm2, %v931_v43, %v4234_v31  ;;  %v763_v1 = vadd.f32 %v731_v4, %v571_v7  ;;  %v3308_v30 = vadd.f32 %v930_v53, %v825_v54  ;;  %v4236_v19 = vrot.slane %v3125_v50, 1 }
 0x13e   : > { %v3310_v58 = vadd.f32 %v933_v3, %v826_v45  ;;  %v4101_v43 = vrot.slane %v3285_v26, 1  ;;  %v3325_v7 = vmul.f32 %v3057_v56, %v2651_v63  ;;  %v3328_v53 = vadd.f32 %v561_v23, %v2997_v29  ;;  %v4239_v23 = vld [vmem:[#allocation21_spill] sm:$0xff] }
 0x13f   : > { %v3320_v51 = vsel %vm918_vm2, %v4236_v19, %v4235_v55  ;;  %v827_v54 = vadd.f32 %v811_v25, %v763_v1  ;;  %v709_v45 = vpop.permute.xlu1 %708  ;;  %v707_v4 = vpop.permute.xlu0 %706  ;;  %v563_v15 = vmul.f32 %v3021_v41, %v2658_v5  ;;  %v4103_v50 = vrot.slane %v3297_v17, 1  ;;  %v4247_v41 = vld [vmem:[#allocation29_spill] sm:$0xff] }
 0x140   : > { %4237 = vst [vmem:[#allocation59_spill] sm:$0xff] %v3328_v53  ;;  %v733_v20 = vsel %vm413_vm1, %v3287_v9, %v707_v4  ;;  %v3337_v55 = vmul.f32 %v3009_v42, %v2508_v37  ;;  %v936_v25 = vsel %vm918_vm2, %v934_v6, %v4100_v39  ;;  %v887_v29 = vmul.f32 %v3041_v48, %v2534_v61 }
 0x141   : > { %v765_v31 = vadd.f32 %v733_v20, %v4239_v23  ;;  %v3346_v3 = vadd.f32 %v936_v25, %v827_v54  ;;  %v940_v1 = vrot.slane %v877_v27, 1  ;;  %v818_v19 = vmul.f32 %v3013_v36, %v2658_v5  ;;  %v4243_v25 = vld [vmem:[#allocation5_spill] sm:$0xff]  ;;  %v4245_v36 = vld [vmem:[#allocation12_spill] sm:$0xff] }
 0x142   : > { %4238 = vst [vmem:[#allocation60_spill] sm:$0xff] %v3337_v55  ;;  %v4240_v42 = vrot.slane %v3135_v8, 1  ;;  %v3360_v48 = vmul.f32 %v3071_v40, %v2508_v37  ;;  %v3364_v23 = vadd.f32 %v563_v15, %v4243_v25  ;;  %v3368_v39 = vmul.f32 %v4245_v36, %v2658_v5  ;;  %v4249_v15 = vld [vmem:[#allocation23_spill] sm:$0xff]  ;;  %v4251_v55 = vld [vmem:[#allocation53_spill] sm:$0xff] }
 0x143   : > { %v829_v54 = vadd.f32 %v3203_v57, %v765_v31  ;;  %v713_v20 = vpop.permute.xlu1 %712  ;;  %v711_v27 = vpop.permute.xlu0 %710  ;;  %v942_v8 = vsel %vm918_vm2, %v940_v1, %v4103_v50  ;;  %v945_v6 = vrot.slane %v887_v29, 1  ;;  %v888_v57 = vmul.f32 %v3045_v34, %v4247_v41  ;;  %v4248_v31 = vld [vmem:[#allocation22_spill] sm:$0xff]  ;;  %v4255_v50 = vld [vmem:[#allocation9_spill] sm:$0xff]  ;;  %v4257_v29 = vld [vmem:[#allocation15_spill] sm:$0xff] }
 0x144   : > { %v3355_v4 = vsel %vm918_vm2, %v4240_v42, %v4101_v43  ;;  %4242 = vst [vmem:[#allocation61_spill] sm:$0xff] %v3360_v48  ;;  %4244 = vst [vmem:[#allocation5_spill] sm:$0xff] %v3364_v23  ;;  %v734_v42 = vsel %vm413_vm1, %v709_v45, %v711_v27  ;;  %v735_v43 = vsel %vm413_vm1, %v711_v27, %v713_v20  ;;  %v4250_v23 = vrot.slane %v3293_v22, 1  ;;  %v4254_v45 = vld [vmem:[#allocation44_spill] sm:$0xff] }
 0x145   : > { %4241 = vst [vmem:[#allocation21_spill] sm:$0xff] %v3355_v4  ;;  %4246 = vst [vmem:[#allocation12_spill] sm:$0xff] %v3368_v39  ;;  %v766_v47 = vadd.f32 %v734_v42, %v4248_v31  ;;  %v767_v25 = vadd.f32 %v735_v43, %v4249_v15  ;;  %v4252_v53 = vrot.slane %v4251_v55, 1  ;;  %v3386_v1 = vadd.f32 %v942_v8, %v829_v54  ;;  %v4258_v42 = vld [vmem:[#allocation2_spill] sm:$0xff] }
 0x146   : > { %v3390_v27 = vmul.f32 %v4255_v50, %v4254_v45  ;;  %v564_v34 = vmul.f32 %v4257_v29, %v4254_v45  ;;  %v820_v31 = vmul.f32 %v4258_v42, %v2520_v35  ;;  %v4262_v29 = vrot.slane %v3325_v7, 1  ;;  %v4263_v42 = vld [vmem:[#allocation54_spill] sm:$0xff] }
 0x147   : > { %v3384_v4 = vsel %vm918_vm2, %v4252_v53, %v4250_v23  ;;  %4253 = vst [vmem:[#allocation22_spill] sm:$0xff] %v3386_v1  ;;  %v830_v15 = vadd.f32 %v3252_v49, %v766_v47  ;;  %v831_v55 = vadd.f32 %v815_v62, %v767_v25  ;;  %v3398_v9 = vpop.permute.xlu1 %716  ;;  %v3400_v53 = vpop.permute.xlu0 %714  ;;  %v4261_v23 = vld [vmem:[#allocation32_spill] sm:$0xff]  ;;  %v4266_v62 = vrot.slane %v3181_v52, 1 }
 0x148   : > { %4256 = vst [vmem:[#allocation23_spill] sm:$0xff] %v3390_v27  ;;  %4259 = vst [vmem:[#allocation53_spill] sm:$0xff] %v3398_v9  ;;  %v890_v50 = vmul.f32 %v3067_v38, %v4261_v23  ;;  %v736_v8 = vsel %vm413_vm1, %v713_v20, %v3400_v53  ;;  %v4264_v27 = vrot.slane %v4263_v42, 1  ;;  %v947_v47 = vrot.slane %v888_v57, 1  ;;  %v4267_v38 = vld [vmem:[#allocation34_spill] sm:$0xff] }
 0x149   : > { %4260 = vst [vmem:[#allocation9_spill] sm:$0xff] %v3400_v53  ;;  %v946_v49 = vsel %vm918_vm2, %v4266_v62, %v945_v6  ;;  %v768_v25 = vadd.f32 %v736_v8, %v576_v11  ;;  %v884_v54 = vmul.f32 %v3083_v32, %v4254_v45  ;;  %v3420_v1 = vadd.f32 %v4267_v38, %v830_v15  ;;  %v4272_v11 = vld [vmem:[#allocation6_spill] sm:$0xff] }
 0x14a   : > { %v3412_v43 = vsel %vm918_vm2, %v4264_v27, %v4262_v29  ;;  %v3422_v20 = vadd.f32 %v946_v49, %v831_v55  ;;  %v580_v53 = vadd.f32 %v564_v34, %v3033_v46  ;;  %v4270_v42 = vrot.slane %v3360_v48, 1  ;;  %v4282_v48 = vld [vmem:[#allocation11_spill] sm:$0xff] }
 0x14b   : > { %4265 = vst [vmem:[#allocation15_spill] sm:$0xff] %v3412_v43  ;;  %4268 = vst [vmem:[#allocation2_spill] sm:$0xff] %v3420_v1  ;;  %v4271_v27 = vrot.slane %v3208_v13, 1  ;;  %v937_v6 = vrot.slane %v3248_v33, 1  ;;  %v1283_v57 = vmul.f32 %v4272_v11, %v2625_v0  ;;  %v832_v8 = vadd.f32 %v3281_v18, %v768_v25  ;;  %v3436_v15 = vpop.permute.xlu1 %720  ;;  %v3438_v55 = vpop.permute.xlu0 %718  ;;  %v4279_v25 = vld [vmem:[#allocation36_spill] sm:$0xff]  ;;  %v4286_v43 = vld [vmem:[#allocation10_spill] sm:$0xff] }
 0x14c   : > { %4269 = vst [vmem:[#allocation32_spill] sm:$0xff] %v3422_v20  ;;  %4273 = vst [vmem:[#allocation54_spill] sm:$0xff] %v3436_v15  ;;  %v4275_v46 = vrot.slane %v3368_v39, 1  ;;  %v4276_v34 = vrot.slane %v3212_v59, 1  ;;  %v3449_v29 = vmul.f32 %v4272_v11, %v4254_v45  ;;  %v951_v33 = vrot.slane %v890_v50, 1  ;;  %v4280_v59 = vld [vmem:[#allocation37_spill] sm:$0xff] }
 0x14d   : > { %v3430_v52 = vsel %vm918_vm2, %v4271_v27, %v4270_v42  ;;  %4274 = vst [vmem:[#allocation34_spill] sm:$0xff] %v3438_v55  ;;  %v738_v18 = vsel %vm413_vm1, %v3398_v9, %v3438_v55  ;;  %v4278_v62 = vrot.slane %v3285_v26, 1  ;;  %v892_v38 = vmul.f32 %v3083_v32, %v4279_v25  ;;  %v4281_v27 = vld [vmem:[#allocation24_spill] sm:$0xff]  ;;  %v4289_v39 = vld [vmem:[#allocation26_spill] sm:$0xff] }
 0x14e   : > { %v3445_v13 = vsel %vm918_vm2, %v4276_v34, %v4275_v46  ;;  %4277 = vst [vmem:[#allocation6_spill] sm:$0xff] %v3449_v29  ;;  %v893_v42 = vmul.f32 %v3097_v2, %v4280_v59  ;;  %v770_v46 = vadd.f32 %v738_v18, %v4281_v27  ;;  %v938_v34 = vrot.slane %v884_v54, 1  ;;  %v4285_v27 = vld [vmem:[#allocation30_spill] sm:$0xff] }
 0x14f   : > { %v948_v49 = vsel %vm918_vm2, %v4278_v62, %v947_v47  ;;  %v1284_v50 = vmul.f32 %v4282_v48, %v2475_v12  ;;  %v3468_v55 = vmul.f32 %v4282_v48, %v2520_v35  ;;  %v1341_v26 = vrot.slane %v1283_v57, 1  ;;  %v4284_v47 = vld [vmem:[#allocation8_spill] sm:$0xff]  ;;  %v725_v9 = vpop.permute.xlu1 %724  ;;  %v723_v18 = vpop.permute.xlu0 %722 }
 0x150   : > { %v3464_v0 = vadd.f32 %v948_v49, %v832_v8  ;;  %v1294_v62 = vmul.f32 %v4284_v47, %v2534_v61  ;;  %v1295_v32 = vmul.f32 %v3053_v28, %v4247_v41  ;;  %v834_v2 = vadd.f32 %v818_v19, %v770_v46  ;;  %v4288_v19 = vld [vmem:[#allocation27_spill] sm:$0xff] }
 0x151   : > { %v889_v8 = vmul.f32 %v4286_v43, %v4285_v27  ;;  %v4287_v49 = vrot.slane %v3238_v24, 1  ;;  %v740_v57 = vsel %vm413_vm1, %v3436_v15, %v723_v18  ;;  %v741_v47 = vsel %vm413_vm1, %v723_v18, %v725_v9 }
 0x152   : > { %4283 = vst [vmem:[#allocation36_spill] sm:$0xff] %v3464_v0  ;;  %v955_v0 = vrot.slane %v892_v38, 1  ;;  %v957_v20 = vrot.slane %v893_v42, 1  ;;  %v772_v28 = vadd.f32 %v740_v57, %v580_v53  ;;  %v773_v46 = vadd.f32 %v741_v47, %v4288_v19  ;;  %v4290_v53 = vld [vmem:[#allocation3_spill] sm:$0xff] }
 0x153   : > { %v952_v45 = vsel %vm918_vm2, %v4287_v49, %v951_v33  ;;  %v3485_v1 = vsel %vm918_vm2, %v937_v6, %v938_v34  ;;  %v1344_v43 = vrot.slane %v1284_v50, 1  ;;  %v4118_v24 = vrot.slane %v3468_v55, 1  ;;  %v1165_v61 = vpop.permute.xlu1 %1164  ;;  %v1163_v9 = vpop.permute.xlu0 %1162 }
 0x154   : > { %v3487_v54 = vadd.f32 %v952_v45, %v834_v2  ;;  %v1350_v41 = vrot.slane %v1294_v62, 1  ;;  %v1352_v33 = vrot.slane %v1295_v32, 1  ;;  %v836_v49 = vadd.f32 %v820_v31, %v772_v28 }
 0x155   : > { %v837_v15 = vadd.f32 %v4289_v39, %v773_v46  ;;  %v949_v38 = vrot.slane %v889_v8, 1  ;;  %v3493_v42 = vmul.f32 %v4290_v53, %v2483_v21  ;;  %v1198_v6 = vsel %vm413_vm1, %v1163_v9, %v1165_v61  ;;  %v4293_v8 = vld [vmem:[#allocation17_spill] sm:$0xff] }
 0x156   : > { %v4291_v45 = vrot.slane %v3449_v29, 1  ;;  %v956_v62 = vsel %vm918_vm2, %v938_v34, %v955_v0  ;;  %v4292_v31 = vrot.slane %v3297_v17, 1  ;;  %v1230_v32 = vadd.f32 %v1198_v6, %v3244_v44 }
 0x157   : > { %v3506_v2 = vadd.f32 %v956_v62, %v836_v49  ;;  %v1431_v57 = vmul.f32 %v4290_v53, %v4293_v8  ;;  %v4294_v0 = vrot.slane %v3224_v16, 1  ;;  %v3530_v47 = vpop.permute.xlu1 %1168  ;;  %v3532_v28 = vpop.permute.xlu0 %1166  ;;  %v4296_v19 = vrot.slane %v3229_v10, 1  ;;  %v4303_v49 = vld [vmem:[#allocation14_spill] sm:$0xff] }
 0x158   : > { %v3499_v50 = vsel %vm918_vm2, %v1341_v26, %v4291_v45  ;;  %v958_v39 = vsel %vm918_vm2, %v4292_v31, %v957_v20  ;;  %v3515_v26 = vsel %vm918_vm2, %v1344_v43, %v4118_v24  ;;  %v4295_v20 = vrot.slane %v3293_v22, 1  ;;  %v4298_v22 = vld [vmem:[#allocation13_spill] sm:$0xff] }
 0x159   : > { %v3508_v18 = vadd.f32 %v958_v39, %v837_v15  ;;  %v3520_v17 = vsel %vm918_vm2, %v4294_v0, %v1350_v41  ;;  %v1296_v15 = vmul.f32 %v3057_v56, %v4285_v27  ;;  %v1382_v34 = vadd.f32 %v3320_v51, %v1230_v32  ;;  %v4301_v43 = vld [vmem:[#allocation45_spill] sm:$0xff] }
 0x15a   : > { %v3525_v44 = vsel %vm918_vm2, %v4295_v20, %v1352_v33  ;;  %v3537_v16 = vsel %vm918_vm2, %v4296_v19, %v949_v38  ;;  %v4117_v41 = vrot.slane %v3493_v42, 2  ;;  %v3542_v46 = vmul.f32 %v4298_v22, %v2651_v63  ;;  %v4305_v38 = vld [vmem:[#allocation49_spill] sm:$0xff]  ;;  %v4309_v19 = vld [vmem:[#allocation19_spill] sm:$0xff] }
 0x15b   : > { %4297 = vst [vmem:[#allocation37_spill] sm:$0xff] %v3537_v16  ;;  %v1199_v56 = vsel %vm413_vm1, %v1165_v61, %v3532_v28  ;;  %v3548_v51 = vmul.f32 %v3071_v40, %v4261_v23  ;;  %v4302_v33 = vrot.slane %v4301_v43, 2  ;;  %v4304_v10 = vrot.slane %v4303_v49, 2  ;;  %v4306_v61 = vld [vmem:[#allocation38_spill] sm:$0xff]  ;;  %v4307_v32 = vld [vmem:[#allocation33_spill] sm:$0xff]  ;;  %v4337_v16 = vld [vmem:[#allocation32_spill] sm:$0xff] }
 0x15c   : > { %4299 = vst [vmem:[#allocation24_spill] sm:$0xff] %v3542_v46  ;;  %v3557_v6 = vmul.f32 %v4305_v38, %v2508_v37  ;;  %v1231_v45 = vadd.f32 %v1199_v56, %v3273_v60  ;;  %v1482_v31 = vrot.slane %v1431_v57, 2  ;;  %v1433_v39 = vmul.f32 %v4298_v22, %v4306_v61  ;;  %v1173_v60 = vpop.permute.xlu1 %1172  ;;  %v4335_v22 = vld [vmem:[#allocation55_spill] sm:$0xff] }
 0x15d   : > { %4300 = vst [vmem:[#allocation11_spill] sm:$0xff] %v3548_v51  ;;  %v1481_v9 = vsel %vm1478_vm3, %v4304_v10, %v4302_v33  ;;  %v1354_v40 = vrot.slane %v1296_v15, 1  ;;  %v3566_v0 = vmul.f32 %v3079_v14, %v4307_v32  ;;  %v1298_v20 = vmul.f32 %v4245_v36, %v4307_v32  ;;  %v4313_v14 = vld [vmem:[#allocation40_spill] sm:$0xff] }
 0x15e   : > { %v3560_v62 = vadd.f32 %v1481_v9, %v1382_v34  ;;  %v1434_v43 = vmul.f32 %v4305_v38, %v4309_v19  ;;  %v1383_v33 = vadd.f32 %v3384_v4, %v1231_v45  ;;  %v1171_v34 = vpop.permute.xlu0 %1170  ;;  %v1300_v57 = vmul.f32 %v4282_v48, %v4280_v59  ;;  %v4310_v4 = vld [vmem:[#allocation50_spill] sm:$0xff] }
 0x15f   : > { %4308 = vst [vmem:[#allocation8_spill] sm:$0xff] %v3566_v0  ;;  %v1484_v15 = vsel %vm1478_vm3, %v1482_v31, %v4117_v41  ;;  %v1201_v56 = vsel %vm413_vm1, %v3530_v47, %v1171_v34  ;;  %v1202_v36 = vsel %vm413_vm1, %v1171_v34, %v1173_v60  ;;  %v3585_v10 = vmul.f32 %v4310_v4, %v2658_v5  ;;  %v4336_v0 = vld [vmem:[#allocation2_spill] sm:$0xff] }
 0x160   : > { %v1233_v9 = vadd.f32 %v1201_v56, %v3308_v30  ;;  %v1234_v48 = vadd.f32 %v1202_v36, %v3310_v58  ;;  %v3589_v45 = vadd.f32 %v1484_v15, %v1383_v33  ;;  %v1488_v31 = vrot.slane %v1433_v39, 2  ;;  %v3600_v30 = vpop.permute.xlu1 %1176 }
 0x161   : > { %4311 = vst [vmem:[#allocation10_spill] sm:$0xff] %v3585_v10  ;;  %v3594_v24 = vmul.f32 %v4272_v11, %v4279_v25  ;;  %v1491_v34 = vrot.slane %v1434_v43, 2  ;;  %v1435_v49 = vmul.f32 %v4310_v4, %v4313_v14  ;;  %v1358_v33 = vrot.slane %v1298_v20, 1  ;;  %v3612_v43 = vld [vmem:[%s4011_s1 + $0x40] ss:$0 sm:$0xff]  ;;  %v4317_v20 = vld [vmem:[#allocation52_spill] sm:$0xff] }
 0x162   : > { %v1385_v29 = vadd.f32 %v3430_v52, %v1233_v9  ;;  %v1386_v32 = vadd.f32 %v3445_v13, %v1234_v48  ;;  %v3602_v58 = vpop.permute.xlu0 %1174  ;;  %v4314_v39 = vrot.slane %v3542_v46, 2  ;;  %4315 = vst [vmem:[#allocation26_spill] sm:$0xff] %v3612_v43  ;;  %v4316_v52 = vrot.slane %v3557_v6, 2  ;;  %v4331_v4 = vld [vmem:[#allocation35_spill] sm:$0xff] }
 0x163   : > { %4312 = vst [vmem:[#allocation27_spill] sm:$0xff] %v3594_v24  ;;  %v1203_v11 = vsel %vm413_vm1, %v1173_v60, %v3602_v58  ;;  %v3620_v36 = vmul.f32 %v4317_v20, %v2520_v35  ;;  %v1362_v48 = vrot.slane %v1300_v57, 1  ;;  %v1437_v56 = vmul.f32 %v4317_v20, %v2475_v12  ;;  %v4329_v24 = vld [vmem:[#allocation43_spill] sm:$0xff] }
 0x164   : > { %v1490_v15 = vsel %vm1478_vm3, %v1488_v31, %v4314_v39  ;;  %v1493_v13 = vsel %vm1478_vm3, %v1491_v34, %v4316_v52  ;;  %v1235_v9 = vadd.f32 %v1203_v11, %v3346_v3  ;;  %v4319_v39 = vrot.slane %v3325_v7, 1  ;;  %v1181_v3 = vpop.permute.xlu1 %1180  ;;  %v4321_v11 = vld [vmem:[#allocation28_spill] sm:$0xff] }
 0x165   : > { %v3623_v31 = vadd.f32 %v1490_v15, %v1385_v29  ;;  %v3625_v60 = vadd.f32 %v1493_v13, %v1386_v32  ;;  %v3632_v34 = vmul.f32 %v3612_v43, %v2483_v21  ;;  %v1494_v52 = vrot.slane %v1435_v49, 2  ;;  %v4322_v13 = vld [vmem:[#allocation22_spill] sm:$0xff] }
 0x166   : > { %v1355_v41 = vsel %vm918_vm2, %v4319_v39, %v1354_v40  ;;  %v1387_v46 = vadd.f32 %v3499_v50, %v1235_v9  ;;  %v1179_v57 = vpop.permute.xlu0 %1178  ;;  %v1838_v7 = vmul.f32 %v3612_v43, %v4293_v8  ;;  %v4320_v21 = vrot.slane %v3585_v10, 2  ;;  %v4323_v39 = vld [vmem:[#allocation12_spill] sm:$0xff] }
 0x167   : > { %4318 = vst [vmem:[#allocation3_spill] sm:$0xff] %v3625_v60  ;;  %v1205_v40 = vsel %vm413_vm1, %v3600_v30, %v1179_v57  ;;  %v1447_v50 = vmul.f32 %v4290_v53, %v4321_v11  ;;  %v4324_v29 = vrot.slane %v4323_v39, 1  ;;  %v4325_v8 = vrot.slane %v3468_v55, 1 }
 0x168   : > { %v1496_v49 = vsel %vm1478_vm3, %v1494_v52, %v4320_v21  ;;  %v1237_v9 = vadd.f32 %v1205_v40, %v4322_v13  ;;  %v4327_v52 = vld [vmem:[#allocation25_spill] sm:$0xff]  ;;  %v4330_v40 = vld [vmem:[#allocation4_spill] sm:$0xff]  ;;  %v1500_v39 = vrot.slane %v1437_v56, 2  ;;  %v1886_v55 = vrot.slane %v1838_v7, 2 }
 0x169   : > { %v3653_v32 = vsel %vm918_vm2, %v4324_v29, %v1358_v33  ;;  %v3658_v57 = vsel %vm918_vm2, %v4325_v8, %v1362_v48  ;;  %v3660_v10 = vadd.f32 %v1496_v49, %v1387_v46  ;;  %v4328_v21 = vld [vmem:[#allocation57_spill] sm:$0xff]  ;;  %v1440_v13 = vmul.f32 %v4330_v40, %v4329_v24  ;;  %v1185_v29 = vpop.permute.xlu1 %1184  ;;  %v3672_v46 = vld [vmem:[%s4011_s1 + $0x48] ss:$0 sm:$0xff]  ;;  %v3677_v48 = vld [vmem:[%s4011_s1 + $0x50] ss:$0 sm:$0xff] }
 0x16a   : > { %v728_v15 = vsel %vm413_vm1, %v4328_v21, %v4327_v52  ;;  %v1389_v33 = vadd.f32 %v4331_v4, %v1237_v9  ;;  %v1183_v51 = vpop.permute.xlu0 %1182  ;;  %v4332_v49 = vld [vmem:[#allocation39_spill] sm:$0xff]  ;;  %v4333_v52 = vld [vmem:[#allocation29_spill] sm:$0xff]  ;;  %v4334_v9 = vrot.slane %v3620_v36, 2  ;;  %v1505_v53 = vrot.slane %v1447_v50, 2 }
 0x16b   : > { %4326 = vst [vmem:[#allocation17_spill] sm:$0xff] %v3660_v10  ;;  %v1432_v8 = vmul.f32 %v4330_v40, %v4332_v49  ;;  %v1448_v56 = vmul.f32 %v4330_v40, %v4333_v52  ;;  %v1206_v4 = vsel %vm413_vm1, %v1181_v3, %v1183_v51  ;;  %v1207_v7 = vsel %vm413_vm1, %v1183_v51, %v1185_v29 }
 0x16c   : > { %v1502_v21 = vsel %vm1478_vm3, %v1500_v39, %v4334_v9  ;;  %v760_v27 = vadd.f32 %v728_v15, %v4335_v22  ;;  %v1238_v10 = vadd.f32 %v1206_v4, %v4336_v0  ;;  %v1239_v43 = vadd.f32 %v1207_v7, %v4337_v16  ;;  %v4343_v7 = vld [vmem:[#allocation20_spill] sm:$0xff] }
 0x16d   : > { %v3691_v11 = vadd.f32 %v1502_v21, %v1389_v33  ;;  %v4338_v60 = vrot.slane %v3632_v34, 2  ;;  %v1486_v3 = vrot.slane %v1440_v13, 2  ;;  %v1839_v51 = vmul.f32 %v3672_v46, %v4332_v49  ;;  %v3706_v16 = vpop.permute.xlu1 %1188 }
 0x16e   : > { %v3702_v50 = vmul.f32 %v3677_v48, %v4306_v61  ;;  %v1390_v22 = vadd.f32 %v3520_v17, %v1238_v10  ;;  %v1391_v0 = vadd.f32 %v3525_v44, %v1239_v43  ;;  %v3708_v15 = vpop.permute.xlu0 %1186  ;;  %v1507_v39 = vrot.slane %v1448_v56, 2  ;;  %v4340_v10 = vld [vmem:[#allocation7_spill] sm:$0xff] }
 0x16f   : > { %v3696_v40 = vsel %vm1478_vm3, %v1886_v55, %v4338_v60  ;;  %v1450_v60 = vmul.f32 %v4305_v38, %v4261_v23  ;;  %v1208_v13 = vsel %vm413_vm1, %v1185_v29, %v3708_v15  ;;  %v1485_v33 = vrot.slane %v1432_v8, 2  ;;  %v4341_v55 = vld [vmem:[#allocation36_spill] sm:$0xff]  ;;  %v4342_v56 = vld [vmem:[#allocation47_spill] sm:$0xff]  ;;  %v4344_v29 = vld [vmem:[#allocation58_spill] sm:$0xff] }
 0x170   : > { %v3716_v61 = vmul.f32 %v3672_v46, %v4329_v24  ;;  %v4339_v17 = vrot.slane %v3493_v42, 2  ;;  %v824_v43 = vadd.f32 %v4340_v10, %v760_v27  ;;  %v1240_v49 = vadd.f32 %v1208_v13, %v4341_v55  ;;  %v4350_v55 = vld [vmem:[#allocation16_spill] sm:$0xff] }
 0x171   : > { %v3724_v4 = vadd.f32 %v4342_v56, %v1390_v22  ;;  %v732_v8 = vsel %vm413_vm1, %v4344_v29, %v4343_v7  ;;  %v3732_v24 = vsel %vm1478_vm3, %v1485_v33, %v1486_v3  ;;  %v3736_v42 = vmul.f32 %v3677_v48, %v2651_v63  ;;  %v3738_v9 = vpop.permute.xlu1 %1192  ;;  %v4348_v7 = vld [vmem:[#allocation44_spill] sm:$0xff] }
 0x172   : > { %v1506_v44 = vsel %vm1478_vm3, %v4339_v17, %v1505_v53  ;;  %v1889_v53 = vrot.slane %v1839_v51, 2  ;;  %v1392_v27 = vadd.f32 %v1355_v41, %v1240_v49  ;;  %v3740_v21 = vpop.permute.xlu0 %1190  ;;  %v1892_v22 = vrot.slane %v3702_v50, 2  ;;  %v3758_v51 = vld [vmem:[%s4011_s1 + $0x60] ss:$0 sm:$0xff]  ;;  %v4345_v50 = vld [vmem:[#allocation51_spill] sm:$0xff] }
 0x173   : > { %v3726_v38 = vadd.f32 %v1506_v44, %v1391_v0  ;;  %v3746_v0 = vld [vmem:[%s4011_s1 + $0x58] ss:$0 sm:$0xff]  ;;  %v1508_v13 = vsel %vm1478_vm3, %v1486_v3, %v1507_v39  ;;  %v1511_v33 = vrot.slane %v1450_v60, 2  ;;  %v1200_v63 = vsel %vm413_vm1, %v3532_v28, %v3530_v47  ;;  %v4346_v39 = vld [vmem:[#allocation31_spill] sm:$0xff] }
 0x174   : > { %v1210_v41 = vsel %vm413_vm1, %v3706_v16, %v3740_v21  ;;  %v1452_v17 = vmul.f32 %v4345_v50, %v4279_v25  ;;  %v1453_v3 = vmul.f32 %v4317_v20, %v4280_v59  ;;  %v764_v60 = vadd.f32 %v732_v8, %v4346_v39  ;;  %v4347_v44 = vld [vmem:[#allocation21_spill] sm:$0xff] }
 0x175   : > { %v977_v10 = vadd.f32 %v4347_v44, %v824_v43  ;;  %v1242_v47 = vadd.f32 %v1210_v41, %v3487_v54  ;;  %v3767_v28 = vadd.f32 %v1508_v13, %v1392_v27  ;;  %v3773_v56 = vmul.f32 %v3746_v0, %v4309_v19  ;;  %v1197_v43 = vpop.permute.xlu1 %1196 }
 0x176   : > { %v3777_v29 = vmul.f32 %v4345_v50, %v4348_v7  ;;  %v1195_v39 = vpop.permute.xlu0 %1194  ;;  %v1842_v54 = vmul.f32 %v3758_v51, %v4313_v14  ;;  %v4349_v27 = vrot.slane %v3557_v6, 2  ;;  %v1515_v44 = vrot.slane %v1452_v17, 2 }
 0x177   : > { %v1232_v20 = vadd.f32 %v1200_v63, %v977_v10  ;;  %v1394_v8 = vadd.f32 %v3653_v32, %v1242_v47  ;;  %v1212_v19 = vsel %vm413_vm1, %v3738_v9, %v1195_v39  ;;  %v1213_v41 = vsel %vm413_vm1, %v1195_v39, %v1197_v43 }
 0x178   : > { %v1512_v13 = vsel %vm1478_vm3, %v4349_v27, %v1511_v33  ;;  %v1517_v49 = vrot.slane %v1453_v3, 2  ;;  %v828_v63 = vadd.f32 %v4350_v55, %v764_v60  ;;  %v1244_v32 = vadd.f32 %v1212_v19, %v3506_v2  ;;  %v4352_v60 = vld [vmem:[#allocation15_spill] sm:$0xff]  ;;  %v4353_v55 = vld [vmem:[#allocation41_spill] sm:$0xff] }
 0x179   : > { %v1245_v10 = vadd.f32 %v1213_v41, %v3508_v18  ;;  %v3791_v47 = vadd.f32 %v1512_v13, %v1394_v8  ;;  %v4351_v14 = vrot.slane %v3716_v61, 2  ;;  %v3798_v33 = vmul.f32 %v3746_v0, %v2508_v37  ;;  %v1725_v43 = vpop.permute.xlu1 %1724 }
 0x17a   : > { %v3802_v17 = vmul.f32 %v3758_v51, %v2658_v5  ;;  %v1498_v3 = vrot.slane %v3777_v29, 2  ;;  %v1384_v2 = vadd.f32 %v4352_v60, %v1232_v20  ;;  %v1396_v18 = vadd.f32 %v3658_v57, %v1244_v32  ;;  %v1723_v39 = vpop.permute.xlu0 %1722 }
 0x17b   : > { %v1891_v6 = vsel %vm1478_vm3, %v1889_v53, %v4351_v14  ;;  %v1397_v8 = vadd.f32 %v4353_v55, %v1245_v10  ;;  %v4354_v53 = vld [vmem:[#allocation42_spill] sm:$0xff]  ;;  %v1204_v37 = vsel %vm413_vm1, %v3602_v58, %v3600_v30  ;;  %v1758_v5 = vsel %vm413_vm1, %v1723_v39, %v1725_v43  ;;  %v4356_v58 = vld [vmem:[#allocation53_spill] sm:$0xff] }
 0x17c   : > { %v1436_v27 = vmul.f32 %v4345_v50, %v4354_v53  ;;  %v1516_v29 = vsel %vm1478_vm3, %v1498_v3, %v1515_v44  ;;  %v4355_v13 = vrot.slane %v3620_v36, 2  ;;  %v981_v57 = vadd.f32 %v3485_v1, %v828_v63  ;;  %v3823_v50 = vld [vmem:[%s4011_s1 + $0x68] ss:$0 sm:$0xff]  ;;  %v4357_v36 = vld [vmem:[#allocation9_spill] sm:$0xff] }
 0x17d   : > { %v1790_v19 = vadd.f32 %v1758_v5, %v3560_v62  ;;  %v3825_v41 = vadd.f32 %v1516_v29, %v1396_v18  ;;  %v737_v1 = vsel %vm413_vm1, %v4357_v36, %v4356_v58  ;;  %v4358_v62 = vrot.slane %v3736_v42, 2  ;;  %v1729_v14 = vpop.permute.xlu1 %1728  ;;  %v4360_v29 = vld [vmem:[#allocation54_spill] sm:$0xff] }
 0x17e   : > { %v1518_v20 = vsel %vm1478_vm3, %v4355_v13, %v1517_v49  ;;  %v1895_v44 = vrot.slane %v3773_v56, 2  ;;  %v1898_v63 = vrot.slane %v1842_v54, 2  ;;  %v1236_v32 = vadd.f32 %v1204_v37, %v981_v57  ;;  %v1727_v18 = vpop.permute.xlu0 %1726  ;;  %v4359_v54 = vld [vmem:[#allocation59_spill] sm:$0xff]  ;;  %v4361_v13 = vld [vmem:[#allocation34_spill] sm:$0xff] }
 0x17f   : > { %v3827_v30 = vadd.f32 %v1518_v20, %v1397_v8  ;;  %v1894_v49 = vsel %vm1478_vm3, %v1892_v22, %v4358_v62  ;;  %v1942_v10 = vadd.f32 %v3696_v40, %v1790_v19  ;;  %v1537_v60 = vadd.f32 %v3732_v24, %v1384_v2  ;;  %v3849_v8 = vld [vmem:[%s4011_s1 + $0x70] ss:$0 sm:$0xff] }
 0x180   : > { %v1896_v55 = vrot.slane %v3798_v33, 2  ;;  %v1759_v39 = vsel %vm413_vm1, %v1725_v43, %v1727_v18  ;;  %v1760_v22 = vsel %vm413_vm1, %v1727_v18, %v1729_v14  ;;  %v1899_v56 = vrot.slane %v3802_v17, 2 }
 0x181   : > { %v1843_v40 = vmul.f32 %v3823_v50, %v4354_v53  ;;  %v769_v37 = vadd.f32 %v737_v1, %v4359_v54  ;;  %1958 = vst [vmem:[%s3834_s6] sm:$0xff] %v1942_v10  ;;  %v1791_v24 = vadd.f32 %v1759_v39, %v3589_v45  ;;  %v1792_v2 = vadd.f32 %v1760_v22, %v1537_v60  ;;  %v1733_v58 = vpop.permute.xlu1 %1732  ;;  %v4362_v10 = vld [vmem:[#allocation60_spill] sm:$0xff] }
 0x182   : > { %v1497_v5 = vrot.slane %v1436_v27, 2  ;;  %v739_v20 = vsel %vm413_vm1, %v4361_v13, %v4360_v29  ;;  %v1844_v43 = vmul.f32 %v3849_v8, %v2475_v12  ;;  %v3866_v57 = vmul.f32 %v3823_v50, %v4348_v7  ;;  %v1731_v1 = vpop.permute.xlu0 %1730  ;;  %v4366_v29 = vld [vmem:[#allocation26_spill] sm:$0xff] }
 0x183   : > { %v3870_v53 = vmul.f32 %v3849_v8, %v2520_v35  ;;  %v1388_v45 = vadd.f32 %v3515_v26, %v1236_v32  ;;  %v1943_v27 = vadd.f32 %v1891_v6, %v1791_v24  ;;  %v1944_v19 = vadd.f32 %v1894_v49, %v1792_v2  ;;  %v4363_v26 = vld [vmem:[#allocation5_spill] sm:$0xff]  ;;  %v4364_v32 = vld [vmem:[#allocation3_spill] sm:$0xff]  ;;  %v4365_v2 = vld [vmem:[#allocation28_spill] sm:$0xff] }
 0x184   : > { %v1897_v36 = vsel %vm1478_vm3, %v1895_v44, %v1896_v55  ;;  %v1900_v12 = vsel %vm1478_vm3, %v1898_v63, %v1899_v56  ;;  %v1761_v7 = vsel %vm413_vm1, %v1729_v14, %v1731_v1  ;;  %v1762_v62 = vsel %vm413_vm1, %v1731_v1, %v1733_v58 }
 0x185   : > { %v1901_v35 = vrot.slane %v1843_v40, 2  ;;  %v833_v60 = vadd.f32 %v4362_v10, %v769_v37  ;;  %v771_v6 = vadd.f32 %v739_v20, %v4363_v26  ;;  %1959 = vst [vmem:[%s3834_s6 + $0x8] sm:$0xff] %v1943_v27  ;;  %1960 = vst [vmem:[%s3834_s6 + $0x10] sm:$0xff] %v1944_v19  ;;  %v1793_v49 = vadd.f32 %v1761_v7, %v3623_v31  ;;  %v1737_v54 = vpop.permute.xlu1 %1736  ;;  %v4368_v19 = vld [vmem:[#allocation37_spill] sm:$0xff]  ;;  %v4370_v7 = vld [vmem:[#allocation8_spill] sm:$0xff] }
 0x186   : > { %v1794_v44 = vadd.f32 %v1762_v62, %v4364_v32  ;;  %v1499_v18 = vsel %vm1478_vm3, %v1497_v5, %v1498_v3  ;;  %v1902_v63 = vrot.slane %v3866_v57, 2  ;;  %v1904_v14 = vrot.slane %v1844_v43, 2  ;;  %v1735_v24 = vpop.permute.xlu0 %1734  ;;  %v4367_v43 = vld [vmem:[#allocation23_spill] sm:$0xff]  ;;  %v4372_v10 = vld [vmem:[#allocation18_spill] sm:$0xff] }
 0x187   : > { %v1905_v39 = vrot.slane %v3870_v53, 2  ;;  %v1945_v22 = vadd.f32 %v1897_v36, %v1793_v49  ;;  %v1541_v37 = vadd.f32 %v1499_v18, %v1388_v45  ;;  %v1854_v13 = vmul.f32 %v4366_v29, %v4365_v2  ;;  %v4369_v45 = vld [vmem:[#allocation17_spill] sm:$0xff]  ;;  %v4376_v18 = vld [vmem:[#allocation56_spill] sm:$0xff] }
 0x188   : > { %v1946_v40 = vadd.f32 %v1900_v12, %v1794_v44  ;;  %v1209_v31 = vsel %vm413_vm1, %v3708_v15, %v3706_v16  ;;  %v1763_v3 = vsel %vm413_vm1, %v1733_v58, %v1735_v24  ;;  %v1764_v5 = vsel %vm413_vm1, %v1735_v24, %v1737_v54  ;;  %v4374_v58 = vld [vmem:[#allocation30_spill] sm:$0xff] }
 0x189   : > { %v1855_v20 = vmul.f32 %v3672_v46, %v4333_v52  ;;  %v835_v27 = vadd.f32 %v4367_v43, %v771_v6  ;;  %v986_v36 = vadd.f32 %v4368_v19, %v833_v60  ;;  %1961 = vst [vmem:[%s3834_s6 + $0x18] sm:$0xff] %v1945_v22  ;;  %v1795_v1 = vadd.f32 %v1763_v3, %v4369_v45  ;;  %v4375_v60 = vld [vmem:[#allocation13_spill] sm:$0xff]  ;;  %v1741_v44 = vpop.permute.xlu1 %1740 }
 0x18a   : > { %1962 = vst [vmem:[%s3834_s6 + $0x20] sm:$0xff] %v1946_v40  ;;  %v1796_v12 = vadd.f32 %v1764_v5, %v1541_v37  ;;  %v4371_v62 = vrot.slane %v4370_v7, 1  ;;  %v4373_v16 = vrot.slane %v4372_v10, 1  ;;  %v1903_v46 = vsel %vm1478_vm3, %v1901_v35, %v1902_v63  ;;  %v1739_v40 = vpop.permute.xlu0 %1738  ;;  %v4377_v5 = vld [vmem:[#allocation11_spill] sm:$0xff]  ;;  %v4379_v19 = vld [vmem:[#allocation61_spill] sm:$0xff]  ;;  %v4387_v7 = vld [vmem:[#allocation6_spill] sm:$0xff] }
 0x18b   : > { %v1906_v52 = vsel %vm1478_vm3, %v1904_v14, %v1905_v39  ;;  %v1449_v26 = vmul.f32 %v4375_v60, %v4374_v58  ;;  %v1241_v6 = vadd.f32 %v1209_v31, %v986_v36  ;;  %v1947_v49 = vadd.f32 %v1903_v46, %v1795_v1  ;;  %v4383_v36 = vld [vmem:[#allocation33_spill] sm:$0xff] }
 0x18c   : > { %v954_v15 = vsel %vm918_vm2, %v4373_v16, %v4371_v62  ;;  %v1948_v32 = vadd.f32 %v1906_v52, %v1796_v12  ;;  %v1907_v22 = vrot.slane %v4376_v18, 2  ;;  %v1211_v37 = vsel %vm413_vm1, %v3740_v21, %v3738_v9 }
 0x18d   : > { %v1765_v35 = vsel %vm413_vm1, %v1737_v54, %v1739_v40  ;;  %v1910_v24 = vrot.slane %v1854_v13, 2  ;;  %v1912_v2 = vrot.slane %v1855_v20, 2  ;;  %v988_v29 = vadd.f32 %v954_v15, %v835_v27  ;;  %1963 = vst [vmem:[%s3834_s6 + $0x28] sm:$0xff] %v1947_v49  ;;  %v4381_v54 = vld [vmem:[#allocation46_spill] sm:$0xff]  ;;  %v1745_v16 = vpop.permute.xlu1 %1744 }
 0x18e   : > { %1964 = vst [vmem:[%s3834_s6 + $0x30] sm:$0xff] %v1948_v32  ;;  %v1797_v14 = vadd.f32 %v1765_v35, %v3691_v11  ;;  %v1856_v31 = vmul.f32 %v3677_v48, %v4374_v58  ;;  %v1857_v3 = vmul.f32 %v3746_v0, %v4261_v23  ;;  %v4378_v43 = vrot.slane %v4377_v5, 1  ;;  %v4384_v11 = vld [vmem:[#allocation50_spill] sm:$0xff]  ;;  %v4385_v48 = vld [vmem:[#allocation27_spill] sm:$0xff]  ;;  %v1743_v15 = vpop.permute.xlu0 %1742 }
 0x18f   : > { %v4380_v9 = vrot.slane %v4379_v19, 1  ;;  %v4382_v13 = vrot.slane %v4381_v54, 2  ;;  %v1509_v27 = vrot.slane %v1449_v26, 2  ;;  %v1451_v45 = vmul.f32 %v4384_v11, %v4383_v36  ;;  %v4394_v19 = vld [vmem:[#allocation10_spill] sm:$0xff] }
 0x190   : > { %v4386_v12 = vrot.slane %v4385_v48, 1  ;;  %v4388_v62 = vrot.slane %v4387_v7, 1  ;;  %v1243_v0 = vadd.f32 %v1211_v37, %v988_v29  ;;  %v4389_v46 = vrot.slane %v3632_v34, 2  ;;  %v4391_v34 = vld [vmem:[#allocation24_spill] sm:$0xff] }
 0x191   : > { %v1357_v21 = vsel %vm918_vm2, %v4380_v9, %v4378_v43  ;;  %v1909_v20 = vsel %vm1478_vm3, %v1907_v22, %v4382_v13  ;;  %v4390_v58 = vrot.slane %v3716_v61, 2  ;;  %v1766_v26 = vsel %vm413_vm1, %v1741_v44, %v1743_v15  ;;  %v1749_v29 = vpop.permute.xlu1 %1748 }
 0x192   : > { %v1393_v1 = vadd.f32 %v1357_v21, %v1241_v6  ;;  %v1361_v23 = vsel %vm918_vm2, %v4388_v62, %v4386_v12  ;;  %v1949_v10 = vadd.f32 %v1909_v20, %v1797_v14  ;;  %v1911_v52 = vsel %vm1478_vm3, %v4389_v46, %v1910_v24 }
 0x193   : > { %v1913_v60 = vsel %vm1478_vm3, %v4390_v58, %v1912_v2  ;;  %v1767_v6 = vsel %vm413_vm1, %v1743_v15, %v1745_v16  ;;  %v1798_v49 = vadd.f32 %v1766_v26, %v3724_v4  ;;  %v1914_v18 = vrot.slane %v1856_v31, 2 }
 0x194   : > { %1965 = vst [vmem:[%s3834_s6 + $0x38] sm:$0xff] %v1949_v10  ;;  %v1799_v32 = vadd.f32 %v1767_v6, %v3726_v38  ;;  %v1916_v22 = vrot.slane %v1857_v3, 2  ;;  %v4392_v40 = vrot.slane %v4391_v34, 2  ;;  %v1513_v61 = vrot.slane %v1451_v45, 2  ;;  %v1747_v38 = vpop.permute.xlu0 %1746  ;;  %v4396_v10 = vld [vmem:[#allocation48_spill] sm:$0xff] }
 0x195   : > { %v1858_v35 = vmul.f32 %v3758_v51, %v4383_v36  ;;  %v1859_v44 = vmul.f32 %v3823_v50, %v4279_v25  ;;  %v1395_v24 = vadd.f32 %v1361_v23, %v1243_v0  ;;  %v1950_v2 = vadd.f32 %v1911_v52, %v1798_v49  ;;  %v1753_v36 = vpop.permute.xlu1 %1752 }
 0x196   : > { %v1510_v37 = vsel %vm1478_vm3, %v4392_v40, %v1509_v27  ;;  %v1951_v4 = vadd.f32 %v1913_v60, %v1799_v32  ;;  %v1768_v31 = vsel %vm413_vm1, %v1745_v16, %v1747_v38  ;;  %v1769_v3 = vsel %vm413_vm1, %v1747_v38, %v1749_v29 }
 0x197   : > { %v1546_v14 = vadd.f32 %v1510_v37, %v1393_v1  ;;  %1966 = vst [vmem:[%s3834_s6 + $0x40] sm:$0xff] %v1950_v2  ;;  %v4393_v5 = vrot.slane %v3736_v42, 2  ;;  %v1917_v25 = vsel %vm1478_vm3, %v1896_v55, %v1916_v22  ;;  %v1800_v50 = vadd.f32 %v1768_v31, %v3767_v28 }
 0x198   : > { %1967 = vst [vmem:[%s3834_s6 + $0x48] sm:$0xff] %v1951_v4  ;;  %v4395_v9 = vrot.slane %v4394_v19, 2  ;;  %v1918_v54 = vrot.slane %v1858_v35, 2  ;;  %v1920_v13 = vrot.slane %v1859_v44, 2  ;;  %v1860_v42 = vmul.f32 %v3849_v8, %v4280_v59  ;;  %v1751_v33 = vpop.permute.xlu0 %1750 }
 0x199   : > { %v1915_v51 = vsel %vm1478_vm3, %v4393_v5, %v1914_v18  ;;  %v1801_v43 = vadd.f32 %v1769_v3, %v1546_v14  ;;  %v1770_v55 = vsel %vm413_vm1, %v1749_v29, %v1751_v33  ;;  %v1771_v28 = vsel %vm413_vm1, %v1751_v33, %v1753_v36  ;;  %v1757_v62 = vpop.permute.xlu1 %1756 }
 0x19a   : > { %v1514_v21 = vsel %vm1478_vm3, %v4395_v9, %v1513_v61  ;;  %v1952_v20 = vadd.f32 %v1915_v51, %v1800_v50  ;;  %v1802_v45 = vadd.f32 %v1770_v55, %v3791_v47  ;;  %v1919_v59 = vsel %vm1478_vm3, %v1899_v56, %v1918_v54 }
 0x19b   : > { %v1953_v27 = vadd.f32 %v1917_v25, %v1801_v43  ;;  %v1548_v11 = vadd.f32 %v1514_v21, %v1395_v24  ;;  %v1921_v8 = vsel %vm1478_vm3, %v1902_v63, %v1920_v13  ;;  %v1922_v48 = vrot.slane %v1860_v42, 2 }
 0x19c   : > { %1968 = vst [vmem:[%s3834_s6 + $0x50] sm:$0xff] %v1952_v20  ;;  %v1954_v12 = vadd.f32 %v1919_v59, %v1802_v45  ;;  %v1755_v23 = vpop.permute.xlu0 %1754 }
 0x19d   : > { %1969 = vst [vmem:[%s3834_s6 + $0x58] sm:$0xff] %v1953_v27  ;;  %v1803_v1 = vadd.f32 %v1771_v28, %v1548_v11  ;;  %v1772_v0 = vsel %vm413_vm1, %v1753_v36, %v1755_v23  ;;  %v1773_v47 = vsel %vm413_vm1, %v1755_v23, %v1757_v62  ;;  %v1923_v57 = vsel %vm1478_vm3, %v1905_v39, %v1922_v48 }
 0x19e   : > { %1970 = vst [vmem:[%s3834_s6 + $0x60] sm:$0xff] %v1954_v12  ;;  %v1804_v17 = vadd.f32 %v1772_v0, %v3825_v41  ;;  %v1805_v56 = vadd.f32 %v1773_v47, %v3827_v30 }
 0x19f   : > { %v1955_v7 = vadd.f32 %v1921_v8, %v1803_v1 }
 0x1a0   : > { %v1956_v63 = vadd.f32 %v1923_v57, %v1804_v17  ;;  %v1957_v16 = vadd.f32 %v4396_v10, %v1805_v56 }
 0x1a1   : > { %1971 = vst [vmem:[%s3834_s6 + $0x68] sm:$0xff] %v1955_v7 }
 0x1a2   : > { %1972 = vst [vmem:[%s3834_s6 + $0x70] sm:$0xff] %v1956_v63  ;;  %1973 = vst [vmem:[%s3834_s6 + $0x78] sm:$0xff] %v1957_v16 }
 0x1a3 PF: > { %s13_s14 = sadd.s32 1, %s2167_s14   ;;  %s4397_s12 = smov %s2163_s13 }
 0x1a4   : > { %p10_p5 = scmp.ge.s32.totalorder %s13_s14, 4   ;;  %s4398_s13 = smov %s4400_s15 }
 0x1a6   :  { %12 = sbr.rel (!%p10_p5) target bundleno = 2 (0x2), region = 68 }

</bundles_post_ra>
